<compile_context>
chip_gen: v6e
topology: v6e:2x2x1
jax: 0.10.0
libtpu: 0.0.40
codegen_flags: <defaults>
</compile_context>

<pallas_src>
import functools

import jax
import jax.numpy as jnp
from jax.experimental import pallas as pl
from jax.experimental.pallas import tpu as pltpu


def _round_up(x, m):
    return (x + m - 1) // m * m


def _res_block_kernel(depth, *refs):
    # refs = (x_ref, *param_refs, o_ref)
    x_ref = refs[0]
    o_ref = refs[-1]
    param_refs = refs[1:-1]

    def dense(h_f32, w_ref, b_ref):
        # bf16 MXU operands, f32 accumulation; bias add stays f32 on the VPU.
        return jnp.dot(h_f32.astype(jnp.bfloat16), w_ref[...],
                       preferred_element_type=jnp.float32) + b_ref[...]

    h = x_ref[...].astype(jnp.float32)

    if depth == 1:
        w_ref, b_ref = param_refs
        h = dense(h, w_ref, b_ref)
    else:
        for d in range(depth):
            w1, b1, w2, b2 = param_refs[4 * d: 4 * d + 4]
            h = jnp.maximum(dense(h, w1, b1), 0.0)  # ReLU after first Linear only
            h = dense(h, w2, b2)

    # Skip connection: re-read the resident x tile (VMEM load, not a DMA) so x's
    # f32 copy does not stay live in vregs across the whole unrolled chain.
    o_ref[...] = (h + x_ref[...].astype(jnp.float32)).astype(o_ref.dtype)


def init_res_block_params(key, input_dim, depth, width):
    """PyTorch nn.Linear-style init (U[-1/sqrt(fan_in), +1/sqrt(fan_in)]).

    Returns a flat list [W, b, W, b, ...]; weights pre-transposed to (in, out)
    and stored bf16 (MXU operands), biases kept f32 as (1, out) rows.
    """
    params = []

    def linear(k, fan_in, fan_out):
        kw, kb = jax.random.split(k)
        bound = 1.0 / float(fan_in) ** 0.5
        w = jax.random.uniform(kw, (fan_in, fan_out), jnp.float32, -bound, bound)
        b = jax.random.uniform(kb, (1, fan_out), jnp.float32, -bound, bound)
        return w.astype(jnp.bfloat16), b

    if depth == 1:
        w, b = linear(key, input_dim, input_dim)
        params += [w, b]
    else:
        keys = jax.random.split(key, 2 * depth)
        for d in range(depth):
            w1, b1 = linear(keys[2 * d], input_dim, width)
            w2, b2 = linear(keys[2 * d + 1], width, input_dim)
            params += [w1, b1, w2, b2]
    return params


def res_block_forward(x, params, depth, *, block_rows=256, donate_input=False):
    """Residual MLP chain + skip inside one Pallas kernel, gridded over batch."""
    batch, input_dim = x.shape

    # Batch tile: multiple of the f32 sublane (8); large enough to amortize the
    # ~0.35 us per-grid-step overhead; capped so tiny batches are not over-padded.
    tm = min(block_rows, _round_up(batch, 8))
    padded = _round_up(batch, tm)
    x_in = x if padded == batch else jnp.pad(x, ((0, padded - batch), (0, 0)))

    grid = (padded // tm,)
    x_spec = pl.BlockSpec((tm, input_dim), lambda i: (i, 0))
    out_spec = pl.BlockSpec((tm, input_dim), lambda i: (i, 0))
    # Constant index_map -> same block every grid step -> params stay VMEM-resident.
    param_specs = [pl.BlockSpec(p.shape, lambda i: (0, 0)) for p in params]

    # Cost estimate (scheduling hint for XLA around the custom call).
    if depth == 1:
        flops = 2 * padded * input_dim * input_dim
    else:
        width = params[0].shape[1]
        flops = depth * 4 * padded * input_dim * width
    param_bytes = sum(p.size * p.dtype.itemsize for p in params)
    bytes_accessed = 2 * padded * input_dim * 4 + param_bytes
    cost = pl.CostEstimate(flops=flops, transcendentals=0,
                           bytes_accessed=bytes_accessed)

    # Explicit VMEM budget: resident params + double-buffered x/out tiles +
    # widest intermediate activation, with headroom; clamped below v7x's 64 MiB.
    widest = max(p.shape[1] for p in params)
    vmem_bytes = (param_bytes
                  + 2 * 2 * tm * input_dim * 4   # double-buffered x and out tiles
                  + 2 * tm * widest * 4          # intermediate activations
                  + (8 << 20))                   # headroom
    vmem_limit = int(min(max(vmem_bytes, 32 << 20), 60 << 20))
    # TODO(synk): for very deep/wide configs whose resident params exceed ~24 MiB
    # (v7x has only 64 MiB VMEM), stream weights per layer via an 'arbitrary' grid
    # axis over depth with h in a VMEM scratch accumulator instead of keeping the
    # whole weight stack resident.

    # Aliasing the input buffer to the output avoids a separate HBM allocation,
    # but clobbers the caller's x when donated under jit -> opt-in only.
    aliases = {0: 0} if donate_input else {}

    out = pl.pallas_call(
        functools.partial(_res_block_kernel, depth),
        out_shape=jax.ShapeDtypeStruct((padded, input_dim), x.dtype),
        grid=grid,
        in_specs=[x_spec] + param_specs,
        out_specs=out_spec,
        input_output_aliases=aliases,
        cost_estimate=cost,
        compiler_params=pltpu.CompilerParams(
            dimension_semantics=("parallel",),  # independent batch tiles (v7x 2-TC)
            vmem_limit_bytes=vmem_limit,
        ),
    )(x_in, *params)

    return out if padded == batch else out[:batch]


def res_block_reference(x, params, depth):
    """Plain-JAX f32 reference (weights upcast) for correctness checking."""
    h = x

    def dense(h, w, b):
        return h @ w.astype(jnp.float32) + b

    if depth == 1:
        w, b = params
        h = dense(h, w, b)
    else:
        for d in range(depth):
            w1, b1, w2, b2 = params[4 * d: 4 * d + 4]
            h = jnp.maximum(dense(h, w1, b1), 0.0)
            h = dense(h, w2, b2)
    return h + x


if __name__ == "__main__":
    # Lane-dense demo shapes: feature dims multiples of 128, batch tiled at 256 rows
    # (two grid steps -> exercises the batch tiling path).
    batch, input_dim, depth, width = 512, 128, 2, 256

    key = jax.random.PRNGKey(0)
    kx, kp = jax.random.split(key)
    x = jax.random.normal(kx, (batch, input_dim), jnp.float32)
    params = init_res_block_params(kp, input_dim, depth, width)

    out = jax.block_until_ready(res_block_forward(x, params, depth))
    ref = res_block_reference(x, params, depth)
    assert out.shape == (batch, input_dim)
    # bf16 MXU operands with f32 accumulation -> loosened tolerance vs f32 reference.
    assert jnp.allclose(out, ref, atol=2e-2, rtol=2e-2)

    # depth == 1 branch, ragged batch (exercises padding) and a tiny feature dim.
    b2, d2 = 20, 32
    x2 = jax.random.normal(jax.random.PRNGKey(1), (b2, d2), jnp.float32)
    params1 = init_res_block_params(jax.random.PRNGKey(2), d2, 1, width)
    out1 = jax.block_until_ready(res_block_forward(x2, params1, 1))
    ref1 = res_block_reference(x2, params1, 1)
    assert out1.shape == (b2, d2)
    assert jnp.allclose(out1, ref1, atol=2e-2, rtol=2e-2)

    print("KERNEL_OK")
</pallas_src>

<mosaic_0001>
module attributes {stable_mosaic.version = 11 : i64} {
  func.func @_res_block_kernel(%arg0: i32, %arg1: memref<256x128xf32, #tpu.memory_space<vmem>>, %arg2: memref<128x256xbf16, #tpu.memory_space<vmem>>, %arg3: memref<1x256xf32, #tpu.memory_space<vmem>>, %arg4: memref<256x128xbf16, #tpu.memory_space<vmem>>, %arg5: memref<1x128xf32, #tpu.memory_space<vmem>>, %arg6: memref<128x256xbf16, #tpu.memory_space<vmem>>, %arg7: memref<1x256xf32, #tpu.memory_space<vmem>>, %arg8: memref<256x128xbf16, #tpu.memory_space<vmem>>, %arg9: memref<1x128xf32, #tpu.memory_space<vmem>>, %arg10: memref<256x128xf32, #tpu.memory_space<vmem>>) attributes {dimension_semantics = [#tpu.dimension_semantics<parallel>], iteration_bounds = array<i64: 2>, scalar_prefetch = 0 : i64, scratch_operands = 0 : i64, tpu.core_type = #tpu.core_type<tc>, window_params = [{transform_indices = @transform_0, window_bounds = array<i64: 256, 128>}, {pipeline_mode = #tpu.pipeline_mode<synchronous>, transform_indices = @transform_1, window_bounds = array<i64: 128, 256>}, {pipeline_mode = #tpu.pipeline_mode<synchronous>, transform_indices = @transform_2, window_bounds = array<i64: 1, 256>}, {pipeline_mode = #tpu.pipeline_mode<synchronous>, transform_indices = @transform_3, window_bounds = array<i64: 256, 128>}, {pipeline_mode = #tpu.pipeline_mode<synchronous>, transform_indices = @transform_4, window_bounds = array<i64: 1, 128>}, {pipeline_mode = #tpu.pipeline_mode<synchronous>, transform_indices = @transform_5, window_bounds = array<i64: 128, 256>}, {pipeline_mode = #tpu.pipeline_mode<synchronous>, transform_indices = @transform_6, window_bounds = array<i64: 1, 256>}, {pipeline_mode = #tpu.pipeline_mode<synchronous>, transform_indices = @transform_7, window_bounds = array<i64: 256, 128>}, {pipeline_mode = #tpu.pipeline_mode<synchronous>, transform_indices = @transform_8, window_bounds = array<i64: 1, 128>}, {transform_indices = @transform_9, window_bounds = array<i64: 256, 128>}]} {
    %c0 = arith.constant 0 : index
    %c0_0 = arith.constant 0 : index
    %0 = vector.load %arg1[%c0, %c0_0] : memref<256x128xf32, #tpu.memory_space<vmem>>, vector<256x128xf32>
    %1 = arith.truncf %0 : vector<256x128xf32> to vector<256x128xbf16>
    %c0_1 = arith.constant 0 : index
    %c0_2 = arith.constant 0 : index
    %2 = vector.load %arg2[%c0_1, %c0_2] : memref<128x256xbf16, #tpu.memory_space<vmem>>, vector<128x256xbf16>
    %cst = arith.constant dense<0.000000e+00> : vector<256x256xf32>
    %3 = tpu.matmul %1, %2, %cst {dimension_numbers = #tpu.dot_dimension_numbers<[1], [0], [0], [1], [0, 0, 1, 1], [], []>} : vector<256x128xbf16>, vector<128x256xbf16>, vector<256x256xf32> -> vector<256x256xf32>
    %c0_3 = arith.constant 0 : index
    %c0_4 = arith.constant 0 : index
    %4 = vector.load %arg3[%c0_3, %c0_4] : memref<1x256xf32, #tpu.memory_space<vmem>>, vector<1x256xf32>
    %5 = vector.broadcast %4 : vector<1x256xf32> to vector<256x256xf32>
    %6 = arith.addf %3, %5 : vector<256x256xf32>
    %cst_5 = arith.constant 0.000000e+00 : f32
    %7 = vector.broadcast %cst_5 : f32 to vector<256x256xf32>
    %8 = arith.maximumf %6, %7 : vector<256x256xf32>
    %9 = arith.truncf %8 : vector<256x256xf32> to vector<256x256xbf16>
    %c0_6 = arith.constant 0 : index
    %c0_7 = arith.constant 0 : index
    %10 = vector.load %arg4[%c0_6, %c0_7] : memref<256x128xbf16, #tpu.memory_space<vmem>>, vector<256x128xbf16>
    %cst_8 = arith.constant dense<0.000000e+00> : vector<256x128xf32>
    %11 = tpu.matmul %9, %10, %cst_8 {dimension_numbers = #tpu.dot_dimension_numbers<[1], [0], [0], [1], [0, 0, 1, 1], [], []>} : vector<256x256xbf16>, vector<256x128xbf16>, vector<256x128xf32> -> vector<256x128xf32>
    %c0_9 = arith.constant 0 : index
    %c0_10 = arith.constant 0 : index
    %12 = vector.load %arg5[%c0_9, %c0_10] : memref<1x128xf32, #tpu.memory_space<vmem>>, vector<1x128xf32>
    %13 = vector.broadcast %12 : vector<1x128xf32> to vector<256x128xf32>
    %14 = arith.addf %11, %13 : vector<256x128xf32>
    %15 = arith.truncf %14 : vector<256x128xf32> to vector<256x128xbf16>
    %c0_11 = arith.constant 0 : index
    %c0_12 = arith.constant 0 : index
    %16 = vector.load %arg6[%c0_11, %c0_12] : memref<128x256xbf16, #tpu.memory_space<vmem>>, vector<128x256xbf16>
    %cst_13 = arith.constant dense<0.000000e+00> : vector<256x256xf32>
    %17 = tpu.matmul %15, %16, %cst_13 {dimension_numbers = #tpu.dot_dimension_numbers<[1], [0], [0], [1], [0, 0, 1, 1], [], []>} : vector<256x128xbf16>, vector<128x256xbf16>, vector<256x256xf32> -> vector<256x256xf32>
    %c0_14 = arith.constant 0 : index
    %c0_15 = arith.constant 0 : index
    %18 = vector.load %arg7[%c0_14, %c0_15] : memref<1x256xf32, #tpu.memory_space<vmem>>, vector<1x256xf32>
    %19 = vector.broadcast %18 : vector<1x256xf32> to vector<256x256xf32>
    %20 = arith.addf %17, %19 : vector<256x256xf32>
    %cst_16 = arith.constant 0.000000e+00 : f32
    %21 = vector.broadcast %cst_16 : f32 to vector<256x256xf32>
    %22 = arith.maximumf %20, %21 : vector<256x256xf32>
    %23 = arith.truncf %22 : vector<256x256xf32> to vector<256x256xbf16>
    %c0_17 = arith.constant 0 : index
    %c0_18 = arith.constant 0 : index
    %24 = vector.load %arg8[%c0_17, %c0_18] : memref<256x128xbf16, #tpu.memory_space<vmem>>, vector<256x128xbf16>
    %cst_19 = arith.constant dense<0.000000e+00> : vector<256x128xf32>
    %25 = tpu.matmul %23, %24, %cst_19 {dimension_numbers = #tpu.dot_dimension_numbers<[1], [0], [0], [1], [0, 0, 1, 1], [], []>} : vector<256x256xbf16>, vector<256x128xbf16>, vector<256x128xf32> -> vector<256x128xf32>
    %c0_20 = arith.constant 0 : index
    %c0_21 = arith.constant 0 : index
    %26 = vector.load %arg9[%c0_20, %c0_21] : memref<1x128xf32, #tpu.memory_space<vmem>>, vector<1x128xf32>
    %27 = vector.broadcast %26 : vector<1x128xf32> to vector<256x128xf32>
    %28 = arith.addf %25, %27 : vector<256x128xf32>
    %c0_22 = arith.constant 0 : index
    %c0_23 = arith.constant 0 : index
    %29 = vector.load %arg1[%c0_22, %c0_23] : memref<256x128xf32, #tpu.memory_space<vmem>>, vector<256x128xf32>
    %30 = arith.addf %28, %29 : vector<256x128xf32>
    %c0_24 = arith.constant 0 : index
    %c0_25 = arith.constant 0 : index
    %31 = vector.load %arg10[%c0_24, %c0_25] : memref<256x128xf32, #tpu.memory_space<vmem>>, vector<256x128xf32>
    tpu.vector_store %arg10[%c0_24, %c0_25], %30 {strides = array<i32>} : memref<256x128xf32, #tpu.memory_space<vmem>>, vector<256x128xf32>,
    return
  }
  func.func @transform_0(%arg0: i32) -> (i32, i32) {
    %c0_i32 = arith.constant 0 : i32
    %c0_i32_0 = arith.constant 0 : i32
    return %arg0, %c0_i32 : i32, i32
  }
  func.func @transform_1(%arg0: i32) -> (i32, i32) {
    %c0_i32 = arith.constant 0 : i32
    %c0_i32_0 = arith.constant 0 : i32
    %c0_i32_1 = arith.constant 0 : i32
    return %c0_i32, %c0_i32_0 : i32, i32
  }
  func.func @transform_2(%arg0: i32) -> (i32, i32) {
    %c0_i32 = arith.constant 0 : i32
    %c0_i32_0 = arith.constant 0 : i32
    %c0_i32_1 = arith.constant 0 : i32
    return %c0_i32, %c0_i32_0 : i32, i32
  }
  func.func @transform_3(%arg0: i32) -> (i32, i32) {
    %c0_i32 = arith.constant 0 : i32
    %c0_i32_0 = arith.constant 0 : i32
    %c0_i32_1 = arith.constant 0 : i32
    return %c0_i32, %c0_i32_0 : i32, i32
  }
  func.func @transform_4(%arg0: i32) -> (i32, i32) {
    %c0_i32 = arith.constant 0 : i32
    %c0_i32_0 = arith.constant 0 : i32
    %c0_i32_1 = arith.constant 0 : i32
    return %c0_i32, %c0_i32_0 : i32, i32
  }
  func.func @transform_5(%arg0: i32) -> (i32, i32) {
    %c0_i32 = arith.constant 0 : i32
    %c0_i32_0 = arith.constant 0 : i32
    %c0_i32_1 = arith.constant 0 : i32
    return %c0_i32, %c0_i32_0 : i32, i32
  }
  func.func @transform_6(%arg0: i32) -> (i32, i32) {
    %c0_i32 = arith.constant 0 : i32
    %c0_i32_0 = arith.constant 0 : i32
    %c0_i32_1 = arith.constant 0 : i32
    return %c0_i32, %c0_i32_0 : i32, i32
  }
  func.func @transform_7(%arg0: i32) -> (i32, i32) {
    %c0_i32 = arith.constant 0 : i32
    %c0_i32_0 = arith.constant 0 : i32
    %c0_i32_1 = arith.constant 0 : i32
    return %c0_i32, %c0_i32_0 : i32, i32
  }
  func.func @transform_8(%arg0: i32) -> (i32, i32) {
    %c0_i32 = arith.constant 0 : i32
    %c0_i32_0 = arith.constant 0 : i32
    %c0_i32_1 = arith.constant 0 : i32
    return %c0_i32, %c0_i32_0 : i32, i32
  }
  func.func @transform_9(%arg0: i32) -> (i32, i32) {
    %c0_i32 = arith.constant 0 : i32
    %c0_i32_0 = arith.constant 0 : i32
    return %arg0, %c0_i32 : i32, i32
  }
}

</mosaic_0001>

<bundles_post_ra>
// kernel: tpu_custom_call.1
= control target key start
LH: loop header
LB: loop body
LE: loop exit
PB: predicated region body
PF: predicated region fallthrough
CT: control target
= control target key end

     0   :  { %s3422_s0 = inlined_call_operand.hbm [shape: f32[512,128], index: 0, kind: input, shape index: {}]   ;;  %s3423_s1 = inlined_call_operand.hbm [shape: bf16[128,256], index: 1, kind: input, shape index: {}]   ;;  %s3424_s2 = inlined_call_operand.vmem [shape: f32[1,256], index: 2, kind: input, shape index: {}]   ;;  %s3425_s3 = inlined_call_operand.hbm [shape: bf16[256,128], index: 3, kind: input, shape index: {}]   ;;  %s3426_s4 = inlined_call_operand.vmem [shape: f32[1,128], index: 4, kind: input, shape index: {}]   ;;  %s3427_s5 = inlined_call_operand.hbm [shape: bf16[128,256], index: 5, kind: input, shape index: {}]   ;;  %s3428_s6 = inlined_call_operand.vmem [shape: f32[1,256], index: 6, kind: input, shape index: {}]   ;;  %s3429_s7 = inlined_call_operand.hbm [shape: bf16[256,128], index: 7, kind: input, shape index: {}]   ;;  %s3430_s8 = inlined_call_operand.vmem [shape: f32[1,128], index: 8, kind: input, shape index: {}]   ;;  %s3431_s9 = inlined_call_operand.hbm [shape: f32[512,128], index: 9, kind: output, shape index: {}]  }
   0x1   :  { %3438 = sst [smem:[#allocation16_spill]] %s3423_s1 }
   0x2   :  { %3439 = sst [smem:[#allocation17_spill]] %s3425_s3 }
   0x3   :  { %3440 = sst [smem:[#allocation18_spill]] %s3427_s5 }
   0x4   :  { %14 = vsyncpa [#allocation3], 0 }
   0x5   :  { %16 = vsyncpa [#allocation3 + $0x1], 0 }
   0x6   :  { %17 = vsyncpa [#allocation6], 0 }
   0x7   :  { %18 = vsyncpa [#allocation9], 0 }
   0x8   :  { %19 = vsyncpa [#allocation4], 0 }
   0x9   :  { %21 = vsyncpa [#allocation4 + $0x1], 0  ;;  %s2840_s30 = smov 0   ;;  %s2842_s10 = smov 0  }
   0xa   :  { %s2844_s11 = smov 0   ;;  %s2846_s12 = smov 0  }
   0xb LB: > { %s2861_s13 = sadd.s32 4294967295, %s2775_s12   ;;  %s2051_s14 = sadd.s32 4294967294, %s2775_s12   ;;  %s2775_s12 = sphi %s2846_s12, %s3464_s12   ;;  %s2771_s11 = sphi %s2844_s11, %s3463_s11   ;;  %s2767_s10 = sphi %s2842_s10, %s3462_s10   ;;  %s2763_s30 = sphi %s2840_s30, %s3461_s30  }
   0xc   : > { %p47_p0 = scmp.ne.s32.totalorder %s2767_s10, %s2763_s30  ;;  %p3432_p1 = scmp.eq.s32.totalorder %s2861_s13, 0 }
   0xd   : > { %p239_p2 = scmp.eq.s32.totalorder %s2861_s13, 1  ;;  %p245_p3 = scmp.eq.s32.totalorder %s2051_s14, 1 }
   0xe   : > { %p2870_p4 = por %p3432_p1, %p47_p0  ;;  %p2052_p5 = scmp.ge.s32.totalorder %s2775_s12, 1 }
   0xf   : > { %p2875_p6 = por %p245_p3, %p47_p0  ;;  %p252_p7 = scmp.lt.s32.totalorder %s2775_s12, 3 }
  0x10   : > { %s3441_s15 = scalar_select %p2870_p4, 1, 0 }
  0x11   : > { %s3442_s16 = scalar_select %p2875_p6, 1, 0 }
  0x12   : > { %p2880_p8 = pnand %p2052_p5, %p252_p7  ;;  %s2777_s18 = smov [#allocation5]  }
  0x13   : > { %s264_s19 = sshll.u32 %s2777_s18, 4  ;;  %s2778_s21 = smov [#allocation8]   ;;  %s265_s19 = int_to_ptr.vmem [resolvable:$true] %s264_s19 }
  0x14   : > { %s3443_s17 = scalar_select %p2880_p8, 1, 0 }
  0x15   : > { %p2385_p9 = pneg %p2880_p8  ;;  %s296_s22 = sshll.u32 %s2778_s21, 4  ;;  %s297_s22 = int_to_ptr.vmem [resolvable:$true] %s296_s22 }
  0x16   : > { %s2779_s23 = smov [#allocation7]   ;;  %s2582_s25 = scalar_lea.vmem %s265_s19, 2048 }
  0x17   : > { %p2889_p11 = pnand %p2385_p9, %p3432_p1  ;;  %s280_s24 = sshll.u32 %s2779_s23, 4  ;;  %s281_s24 = int_to_ptr.vmem [resolvable:$true] %s280_s24 }
  0x18   : > { %p2583_p13 = scmp.ne.s32.totalorder %s265_s19, %s2582_s25  ;;  %p2590_p5 = scmp.lt.s32.totalorder %s265_s19, %s265_s19 }
  0x19   : > { %p2573_p12 = pneg %p2889_p11  ;;  %p2591_p7 = scmp.lt.s32.totalorder %s2582_s25, %s2582_s25 }
  0x1b   : > { %p2585_p0 = pnand %p2583_p13, %p2573_p12  ;;  %p2592_p9 = por %p2591_p7, %p2590_p5 }
  0x1d   : > { %p2586_p3 = pneg %p2585_p0 }
  0x1f   : > { %p2593_p10 = pnand %p2592_p9, %p2586_p3 }
  0x21   : > { %2596 = shalt.err (!%p2593_p10)
}
  0x22   : > { %s3433_s26 = smov 128   ;;  %s3434_s27 = smov 8  }
  0x23   : > { %s3445_s1 = sld [smem:[#allocation16_spill]]  ;;  %s2608_s14 = scalar_lea.vmem %s297_s22, 2048 }
  0x24   : > { %p2609_p13 = scmp.ne.s32.totalorder %s297_s22, %s2608_s14  ;;  %p2616_p3 = scmp.lt.s32.totalorder %s297_s22, %s297_s22 }
  0x25   : > { %p2617_p10 = scmp.lt.s32.totalorder %s2608_s14, %s2608_s14 }
  0x26   : > { %p2611_p0 = pnand %p2609_p13, %p2573_p12 }
  0x27   : > { %p2618_p7 = por %p2617_p10, %p2616_p3 }
  0x28   : > { %p2612_p5 = pneg %p2611_p0 }
  0x29   : > { %2388 = dma.hbm_to_vmem [thread:$0]  (!%p2889_p11), %s3445_s1, 2048, %s265_s19, [#allocation6], %s3433_s26, %s3433_s26, %s3434_s27  }
  0x2a   : > { %p2619_p9 = pnand %p2618_p7, %p2612_p5 }
  0x2c   : > { %2622 = shalt.err (!%p2619_p9)
}
  0x2d   : > { %s3446_s5 = sld [smem:[#allocation18_spill]]  ;;  %s2634_s19 = scalar_lea.vmem %s281_s24, 2048 }
  0x2e   : > { %p2635_p1 = scmp.ne.s32.totalorder %s281_s24, %s2634_s19  ;;  %p2642_p3 = scmp.lt.s32.totalorder %s281_s24, %s281_s24 }
  0x2f   : > { %p2643_p5 = scmp.lt.s32.totalorder %s2634_s19, %s2634_s19 }
  0x30   : > { %p2637_p13 = pnand %p2635_p1, %p2573_p12 }
  0x31   : > { %p2644_p10 = por %p2643_p5, %p2642_p3 }
  0x32   : > { %p2638_p0 = pneg %p2637_p13 }
  0x33   : > { %2394 = dma.hbm_to_vmem [thread:$0]  (!%p2889_p11), %s3446_s5, 2048, %s297_s22, [#allocation9], %s3433_s26, %s3433_s26, %s3434_s27  }
  0x34   : > { %p2645_p7 = pnand %p2644_p10, %p2638_p0 }
  0x36   : > { %2648 = shalt.err (!%p2645_p7)
}
  0x37   : > { %s2782_s23 = smov 64   ;;  %s2783_s25 = smov 4  }
  0x38   : > { %s3447_s3 = sld [smem:[#allocation17_spill]]  ;;  %s2784_s22 = smov [#allocation10]  }
  0x39   : > { %s312_s14 = sshll.u32 %s2784_s22, 4  ;;  %s313_s14 = int_to_ptr.vmem [resolvable:$true] %s312_s14 }
  0x3a   : > { %s2660_s18 = scalar_lea.vmem %s313_s14, 2048  ;;  %p2668_p0 = scmp.lt.s32.totalorder %s313_s14, %s313_s14 }
  0x3b   : > { %p2661_p1 = scmp.ne.s32.totalorder %s313_s14, %s2660_s18  ;;  %p2669_p3 = scmp.lt.s32.totalorder %s2660_s18, %s2660_s18 }
  0x3d   : > { %p2663_p9 = pnand %p2661_p1, %p2573_p12  ;;  %p2670_p5 = por %p2669_p3, %p2668_p0 }
  0x3e   : > { %2391 = dma.hbm_to_vmem [thread:$0]  (!%p2889_p11), %s3447_s3, 2048, %s281_s24, [#allocation6], %s2782_s23, %s2782_s23, %s2783_s25  }
  0x3f   : > { %p2664_p13 = pneg %p2663_p9 }
  0x41   : > { %p2671_p10 = pnand %p2670_p5, %p2664_p13 }
  0x43   : > { %2674 = shalt.err (!%p2671_p10)
}
  0x44   : > { %2397 = dma.hbm_to_vmem [thread:$0]  (!%p2889_p11), %s3429_s7, 2048, %s313_s14, [#allocation9], %s2782_s23, %s2782_s23, %s2783_s25  }
  0x45   : > { %s2934_s24 = sadd.s32 1, %s2775_s12   ;;  %s34_s28 = sadd.s32 1, %s2771_s11 }
  0x46   : > { %s31_s20 = ssub.s32 %s2775_s12, %s2934_s24  ;;  %p41_p12 = scmp.ne.s32.totalorder %s2771_s11, %s2767_s10 }
  0x47   : > { %p32_p7 = scmp.eq.s32.totalorder %s31_s20, 0  ;;  %p42_p1 = scmp.eq.s32.totalorder %s2775_s12, 0 }
  0x48   : > { %p2944_p9 = por %p239_p2, %p41_p12  ;;  %p2410_p13 = scmp.lt.s32.totalorder %s2775_s12, 2 }
  0x49   : > { %s2950_s22 = scalar_select %p32_p7, %s2771_s11, %s34_s28  }
  0x4a   : > { %s3448_s29 = scalar_select %p2944_p9, 1, 0 }
  0x4b   : > { %p43_p0 = por %p42_p1, %p41_p12  ;;  %s329_s18 = sand.u32 1, %s2771_s11  }
  0x4c   : > { %s2058_s21 = sshll.u32 %s329_s18, 8  ;;  %s2139_s23 = sshll.u32 %s2775_s12, 12 }
  0x4d   : > { %s2957_s19 = scalar_lea.hbm %s3422_s0, %s2139_s23  ;;  %s333_s20 = scalar_lea.vmem [#allocation2], %s2058_s21 }
  0x4e   : > { %s340_s26 = sshll.u32 %s333_s20, 4  ;;  %p2961_p2 = pnand %p2410_p13, %p43_p0  ;;  %s2959_s26 = int_to_ptr.vmem [resolvable:$true] %s340_s26 }
  0x4f   : > { %s2965_s28 = scalar_lea.sflag [#allocation3], %s329_s18  ;;  %s2675_s1 = scalar_lea.hbm %s2957_s19, 4096 }
  0x50   : > { %p2676_p11 = scmp.ne.s32.totalorder %s2957_s19, %s2675_s1  ;;  %p2677_p3 = pneg %p2961_p2 }
  0x51   : > { %s2680_s21 = scalar_lea.hbm %s3422_s0, 8192  ;;  %p2681_p12 = scmp.lt.s32.totalorder %s2957_s19, %s3422_s0 }
  0x52   : > { %p2678_p5 = pnand %p2677_p3, %p2676_p11  ;;  %p2682_p7 = scmp.lt.s32.totalorder %s2680_s21, %s2675_s1 }
  0x54   : > { %p2679_p10 = pneg %p2678_p5  ;;  %p2683_p1 = por %p2682_p7, %p2681_p12 }
  0x56   : > { %p2684_p13 = pnand %p2683_p1, %p2679_p10 }
  0x58   : > { %2687 = shalt.err (!%p2684_p13)
}
  0x59   : > { %s2688_s18 = scalar_lea.vmem %s2959_s26, 4096  ;;  %s2785_s3 = smov [#allocation2]  }
  0x5a   : > { %p2689_p0 = scmp.ne.s32.totalorder %s2959_s26, %s2688_s18  ;;  %s2693_s5 = sshll.u32 %s2785_s3, 4  ;;  %s2694_s5 = int_to_ptr.vmem [resolvable:$false] %s2693_s5 }
  0x5b   : > { %s2695_s23 = scalar_lea.vmem %s2694_s5, 8192  ;;  %p2696_p5 = scmp.lt.s32.totalorder %s2959_s26, %s2694_s5 }
  0x5c   : > { %p2691_p6 = pnand %p2689_p0, %p2677_p3  ;;  %p2697_p9 = scmp.lt.s32.totalorder %s2695_s23, %s2688_s18 }
  0x5e   : > { %p2692_p11 = pneg %p2691_p6  ;;  %p2698_p4 = por %p2697_p9, %p2696_p5 }
  0x60   : > { %p2699_p8 = pnand %p2698_p4, %p2692_p11 }
  0x62   : > { %2702 = shalt.err (!%p2699_p8)
}
  0x63   : > { %s3450_s1 = smov 8   ;;  %s3451_s25 = smov 128  }
  0x64   : > { %2401 = dma.hbm_to_vmem [thread:$0]  (!%p2961_p2), %s2957_s19, 4096, %s2959_s26, %s2965_s28, %s3451_s25, %s3451_s25, %s3450_s1  }
  0x65   : > { %p3452_p6 = scmp.ne.s32.totalorder %s3443_s17, 0 }
  0x66   : > { %s2992_s3 = sand.u32 (!%p3452_p6), 1, %s2767_s10   ;;  %p3453_p4 = scmp.ne.s32.totalorder (!%p3452_p6), %s3441_s15, 0 }
  0x67   : > { %352 = sbr.rel (%p3452_p6) target bundleno = 1104 (0x450), region = 56  ;;  %s2062_s5 = sshll.u32 (!%p3452_p6), %s2992_s3, 8 }
  0x68   : > { %s355_s21 = scalar_lea.sflag (!%p3452_p6), [#allocation3], %s2992_s3  ;;  %s2998_s27 = scalar_lea.vmem (!%p3452_p6), [#allocation2], %s2062_s5 }
  0x6c   : > { %2746 = dma.done.wait (%p3453_p4), %s355_s21, 4096  }
  0x6d   : > { %2748 = vsyncadd (%p3453_p4), %s355_s21, 4294963200  ;;  %p3454_p8 = scmp.eq.s32.totalorder %s2861_s13, 0 }
  0x6f   : > { %2750 = dma.done.wait (%p3454_p8), [#allocation6], 4096   ;;  %p3455_p9 = pmov %p3454_p8 }
  0x70   : > { %p3456_p2 = pmov %p3454_p8 }
  0x71   : > { %2752 = vsyncadd (%p3455_p9), [#allocation6], 4294963200 }
  0x72   : > { %2754 = dma.done.wait (%p3456_p2), [#allocation9], 4096   ;;  %p3457_p3 = pmov %p3456_p2 }
  0x73   : > { %v2786_v0 = vmov 0   ;;  %v2459_v1 = vld [vmem:[#allocation5 + $0x74] ss:$8 sps:$4 sm:$0xff]   ;;  %v2461_v2 = vld [vmem:[#allocation5 + $0x70] ss:$8 sps:$4 sm:$0xff]   ;;  %v412_v20 = vld [vmem:[%s2998_s27] sm:$0xff] }
  0x74   : > { %2756 = vsyncadd (%p3457_p3), [#allocation9], 4294963200  ;;  %600 = vmatprep.mubr.bf16.mxu0 %v2786_v0  ;;  %568 = vmatprep.subr.bf16.mxu0 %v2459_v1  ;;  %v2462_v3 = vld [vmem:[#allocation5 + $0x64] ss:$8 sps:$4 sm:$0xff]   ;;  %v2464_v4 = vld [vmem:[#allocation5 + $0x60] ss:$8 sps:$4 sm:$0xff]  }
  0x75   : > { %569 = vmatpush1.bf16.msra.mxu0 %v2461_v2  ;;  %v2465_v5 = vld [vmem:[#allocation5 + $0x54] ss:$8 sps:$4 sm:$0xff]   ;;  %v2467_v6 = vld [vmem:[#allocation5 + $0x50] ss:$8 sps:$4 sm:$0xff]   ;;  %v2468_v7 = vld [vmem:[#allocation5 + $0x44] ss:$8 sps:$4 sm:$0xff]  }
  0x76   : > { %570 = vmatprep.subr.bf16.mxu0 %v2462_v3  ;;  %v2470_v8 = vld [vmem:[#allocation5 + $0x40] ss:$8 sps:$4 sm:$0xff]   ;;  %v2471_v9 = vld [vmem:[#allocation5 + $0x34] ss:$8 sps:$4 sm:$0xff]   ;;  %v2473_v10 = vld [vmem:[#allocation5 + $0x30] ss:$8 sps:$4 sm:$0xff]  }
  0x77   : > { %v2474_v11 = vld [vmem:[#allocation5 + $0x24] ss:$8 sps:$4 sm:$0xff]   ;;  %v2476_v12 = vld [vmem:[#allocation5 + $0x20] ss:$8 sps:$4 sm:$0xff]   ;;  %v2477_v13 = vld [vmem:[#allocation5 + $0x14] ss:$8 sps:$4 sm:$0xff]  }
  0x78   : > { %v2479_v14 = vld [vmem:[#allocation5 + $0x10] ss:$8 sps:$4 sm:$0xff]   ;;  %v2480_v15 = vld [vmem:[#allocation5 + $0x4] ss:$8 sps:$4 sm:$0xff]   ;;  %v2482_v19 = vld [vmem:[#allocation5] ss:$8 sps:$4 sm:$0xff]  }
  0x79   : > { %571 = vmatpush1.bf16.msra.mxu0 %v2464_v4  ;;  %v2483_v16 = vld [vmem:[#allocation7 + $0x78] sm:$0xff]   ;;  %v2485_v18 = vld [vmem:[#allocation7 + $0x70] sm:$0xff]   ;;  %v413_v21 = vld [vmem:[%s2998_s27 + $0x8] sm:$0xff]  ;;  %s3276_s23 = scalar_lea.vmem [#allocation11], %s2062_s5  ;;  %s2140_s1 = sshll.u32 %s2861_s13, 12 }
  0x7a   : > { %572 = vmatprep.subr.bf16.mxu0 %v2465_v5  ;;  %v2484_v17 = vld [vmem:[#allocation7 + $0x38] sm:$0xff]   ;;  %2141 = vmatprep.subr.bf16.mxu1 %v2483_v16  ;;  %v2486_v22 = vld [vmem:[#allocation7 + $0x30] sm:$0xff]   ;;  %v444_v23 = vpack.c.bf16 %v413_v21, %v412_v20  ;;  %v2487_v24 = vld [vmem:[#allocation7 + $0x68] sm:$0xff]   ;;  %s1940_s25 = sshll.u32 %s3276_s23, 4  ;;  %s3375_s15 = scalar_lea.hbm %s3431_s9, %s2140_s1  ;;  %s3377_s25 = int_to_ptr.vmem [resolvable:$true] %s1940_s25 }
  0x7b   : > { %2142 = vmatpush3.bf16.msra.mxu1 %v2484_v17  ;;  %v2488_v25 = vld [vmem:[#allocation7 + $0x28] sm:$0xff]   ;;  %v2489_v26 = vld [vmem:[#allocation7 + $0x60] sm:$0xff]   ;;  %v414_v27 = vld [vmem:[%s2998_s27 + $0x10] sm:$0xff]  ;;  %s1927_s17 = scalar_lea.sflag [#allocation4], %s2992_s3  ;;  %s2703_s26 = scalar_lea.vmem %s3377_s25, 4096 }
  0x7c   : > { %2143 = vmatprep.subr.bf16.mxu1 %v2485_v18  ;;  %v415_v28 = vld [vmem:[%s2998_s27 + $0x18] sm:$0xff]  ;;  %v2490_v29 = vld [vmem:[#allocation7 + $0x20] sm:$0xff]   ;;  %v417_v34 = vld [vmem:[%s2998_s27 + $0x28] sm:$0xff]  ;;  %p2704_p10 = scmp.ne.s32.totalorder %s3377_s25, %s2703_s26  ;;  %p3458_p12 = scmp.ne.s32.totalorder %s3448_s29, 0 }
  0x7d   : > { %573 = vmatpush1.bf16.msra.mxu0 %v2467_v6  ;;  %v2491_v30 = vld [vmem:[#allocation7 + $0x58] sm:$0xff]   ;;  %v445_v31 = vpack.c.bf16 %v415_v28, %v414_v27  ;;  %v416_v33 = vld [vmem:[%s2998_s27 + $0x20] sm:$0xff]  ;;  %v418_v36 = vld [vmem:[%s2998_s27 + $0x30] sm:$0xff]  ;;  %s2787_s13 = smov [#allocation11]  }
  0x7e   : > { %574 = vmatprep.subr.bf16.mxu0 %v2468_v7  ;;  %v2492_v32 = vld [vmem:[#allocation7 + $0x18] sm:$0xff]   ;;  %v446_v35 = vpack.c.bf16 %v417_v34, %v416_v33  ;;  %v420_v39 = vld [vmem:[%s2998_s27 + $0x40] sm:$0xff]  ;;  %v421_v40 = vld [vmem:[%s2998_s27 + $0x48] sm:$0xff]  ;;  %p2705_p7 = pnand %p2704_p10, %p3458_p12  ;;  %s2707_s19 = sshll.u32 %s2787_s13, 4  ;;  %s2708_s19 = int_to_ptr.vmem [resolvable:$false] %s2707_s19 }
  0x7f   : > { %2144 = vmatpush3.bf16.msra.mxu1 %v2486_v22  ;;  %v419_v37 = vld [vmem:[%s2998_s27 + $0x38] sm:$0xff]  ;;  %v448_v41 = vpack.c.bf16 %v421_v40, %v420_v39  ;;  %v422_v42 = vld [vmem:[%s2998_s27 + $0x50] sm:$0xff]  ;;  %v424_v45 = vld [vmem:[%s2998_s27 + $0x60] sm:$0xff]  ;;  %v478_v22 = vlaneseq  ;;  %s2709_s28 = scalar_lea.vmem %s2708_s19, 8192  ;;  %p2710_p13 = scmp.lt.s32.totalorder %s3377_s25, %s2708_s19 }
  0x80   : > { %2145 = vmatprep.subr.bf16.mxu1 %v2487_v24  ;;  %v447_v38 = vpack.c.bf16 %v419_v37, %v418_v36  ;;  %v423_v43 = vld [vmem:[%s2998_s27 + $0x58] sm:$0xff]  ;;  %v425_v46 = vld [vmem:[%s2998_s27 + $0x68] sm:$0xff]  ;;  %v426_v48 = vld [vmem:[%s2998_s27 + $0x70] sm:$0xff]  ;;  %p2706_p1 = pneg %p2705_p7  ;;  %p2711_p0 = scmp.lt.s32.totalorder %s2709_s28, %s2703_s26 }
  0x81   : > { %575 = vmatpush1.bf16.msra.mxu0 %v2470_v8  ;;  %v449_v44 = vpack.c.bf16 %v423_v43, %v422_v42  ;;  %v450_v47 = vpack.c.bf16 %v425_v46, %v424_v45  ;;  %v427_v49 = vld [vmem:[%s2998_s27 + $0x78] sm:$0xff]  ;;  %v428_v51 = vld [vmem:[%s2998_s27 + $0x80] sm:$0xff]  ;;  %v429_v52 = vld [vmem:[%s2998_s27 + $0x88] sm:$0xff] }
  0x82   : > { %576 = vmatprep.subr.bf16.mxu0 %v2471_v9  ;;  %v451_v50 = vpack.c.bf16 %v427_v49, %v426_v48  ;;  %v452_v53 = vpack.c.bf16 %v429_v52, %v428_v51  ;;  %v2493_v54 = vld [vmem:[#allocation7 + $0x50] sm:$0xff]   ;;  %v431_v56 = vld [vmem:[%s2998_s27 + $0x98] sm:$0xff]  ;;  %v2495_v59 = vld [vmem:[#allocation7 + $0x48] sm:$0xff]   ;;  %p2712_p11 = por %p2711_p0, %p2710_p13 }
  0x83   : > { %2146 = vmatpush3.bf16.msra.mxu1 %v2488_v25  ;;  %v430_v55 = vld [vmem:[%s2998_s27 + $0x90] sm:$0xff]  ;;  %v2496_v60 = vld [vmem:[#allocation7 + $0x8] sm:$0xff]   ;;  %v2497_v61 = vld [vmem:[#allocation7 + $0x40] sm:$0xff]  }
  0x84   : > { %2147 = vmatprep.subr.bf16.mxu1 %v2489_v26  ;;  %v2494_v57 = vld [vmem:[#allocation7 + $0x10] sm:$0xff]   ;;  %v453_v58 = vpack.c.bf16 %v431_v56, %v430_v55  ;;  %v432_v62 = vld [vmem:[%s2998_s27 + $0xa0] sm:$0xff]  ;;  %v433_v63 = vld [vmem:[%s2998_s27 + $0xa8] sm:$0xff]  ;;  %p2713_p5 = pnand %p2712_p11, %p2706_p1 }
  0x85   : > { %577 = vmatpush1.bf16.msra.mxu0 %v2473_v10  ;;  %v2498_v1 = vld [vmem:[#allocation7] sm:$0xff]   ;;  %v454_v2 = vpack.c.bf16 %v433_v63, %v432_v62  ;;  %v434_v3 = vld [vmem:[%s2998_s27 + $0xb0] sm:$0xff]  ;;  %v435_v4 = vld [vmem:[%s2998_s27 + $0xb8] sm:$0xff] }
  0x86   : > { %578 = vmatprep.subr.bf16.mxu0 %v2474_v11  ;;  %v455_v5 = vpack.c.bf16 %v435_v4, %v434_v3  ;;  %v436_v6 = vld [vmem:[%s2998_s27 + $0xc0] sm:$0xff]  ;;  %v437_v7 = vld [vmem:[%s2998_s27 + $0xc8] sm:$0xff]  ;;  %v438_v9 = vld [vmem:[%s2998_s27 + $0xd0] sm:$0xff] }
  0x87   : > { %2148 = vmatpush3.bf16.msra.mxu1 %v2490_v29  ;;  %v456_v8 = vpack.c.bf16 %v437_v7, %v436_v6  ;;  %v439_v10 = vld [vmem:[%s2998_s27 + $0xd8] sm:$0xff]  ;;  %v2502_v20 = vld [vmem:[#allocation8 + $0x60] ss:$8 sps:$4 sm:$0xff]   ;;  %v2504_v21 = vld [vmem:[#allocation8 + $0x64] ss:$8 sps:$4 sm:$0xff]  }
  0x88   : > { %2149 = vmatprep.subr.bf16.mxu1 %v2491_v30  ;;  %v457_v11 = vpack.c.bf16 %v439_v10, %v438_v9  ;;  %v443_v16 = vld [vmem:[%s2998_s27 + $0xf8] sm:$0xff]  ;;  %v476_v28 = vld [vmem:[%s3424_s2] sm:$0x3]  ;;  %v2510_v39 = vld [vmem:[#allocation8 + $0x44] ss:$8 sps:$4 sm:$0xff]  }
  0x89   : > { %579 = vmatpush1.bf16.msra.mxu0 %v2476_v12  ;;  %v440_v12 = vld [vmem:[%s2998_s27 + $0xe0] sm:$0xff]  ;;  %v2499_v18 = vld [vmem:[#allocation8 + $0x70] ss:$8 sps:$4 sm:$0xff]   ;;  %v2507_v26 = vld [vmem:[#allocation8 + $0x54] ss:$8 sps:$4 sm:$0xff]  }
  0x8a   : > { %580 = vmatprep.subr.bf16.mxu0 %v2477_v13  ;;  %v441_v13 = vld [vmem:[%s2998_s27 + $0xe8] sm:$0xff]  ;;  %v2505_v25 = vld [vmem:[#allocation8 + $0x50] ss:$8 sps:$4 sm:$0xff]  }
  0x8b   : > { %2150 = vmatpush3.bf16.msra.mxu1 %v2492_v32  ;;  %v2511_v46 = vld [vmem:[#allocation8 + $0x30] ss:$8 sps:$4 sm:$0xff]   ;;  %v2516_v49 = vld [vmem:[#allocation8 + $0x24] ss:$8 sps:$4 sm:$0xff]   ;;  %v2514_v55 = vld [vmem:[#allocation8 + $0x20] ss:$8 sps:$4 sm:$0xff]  }
  0x8c   : > { %2151 = vmatprep.subr.bf16.mxu1 %v2493_v54  ;;  %v2522_v4 = vld [vmem:[#allocation8 + $0x4] ss:$8 sps:$4 sm:$0xff]   ;;  %v2520_v10 = vld [vmem:[#allocation8] ss:$8 sps:$4 sm:$0xff]  }
  0x8d   : > { %581 = vmatpush1.bf16.msra.mxu0 %v2479_v14  ;;  %v458_v14 = vpack.c.bf16 %v441_v13, %v440_v12 }
  0x8e   : > { %582 = vmatprep.subr.bf16.mxu0 %v2480_v15  ;;  %v442_v15 = vld [vmem:[%s2998_s27 + $0xf0] sm:$0xff] }
  0x8f   : > { %2152 = vmatpush3.bf16.msra.mxu1 %v2494_v57  ;;  %v459_v17 = vpack.c.bf16 %v443_v16, %v442_v15 }
  0x90   : > { %2153 = vmatprep.subr.bf16.mxu1 %v2495_v59 }
  0x91   : > { %583 = vmatpush1.bf16.msra.mxu0 %v2482_v19  ;;  %v2501_v19 = vld [vmem:[#allocation8 + $0x74] ss:$8 sps:$4 sm:$0xff]  }
  0x92   : > { %1277 = vmatprep.subr.bf16.mxu0 %v2501_v19 }
  0x93   : > { %2154 = vmatpush3.bf16.msra.mxu1 %v2496_v60 }
  0x94   : > { %601 = vmatmul.mubr.bf16.vlgmr.msra.gmra.mxu0 %v444_v23  ;;  %2155 = vmatprep.subr.bf16.mxu1 %v2497_v61  ;;  %v3061_v23 = vshrl.u32 %v478_v22, 7 }
  0x95   : > { %610 = vmatprep.mubr.bf16.mxu0 %v2786_v0  ;;  %1278 = vmatpush1.bf16.msra.mxu0 %v2499_v18 }
  0x96   : > { %1279 = vmatprep.subr.bf16.mxu0 %v2504_v21  ;;  %v484_v24 = vsub.s32 1, %v3061_v23  ;;  %v480_v27 = vsub.s32 0, %v3061_v23 }
  0x97   : > { %2156 = vmatpush3.bf16.msra.mxu1 %v2498_v1  ;;  %v2517_v1 = vld [vmem:[#allocation8 + $0x10] ss:$8 sps:$4 sm:$0xff]  }
  0x98   : > { %v3070_v30 = vrot.slane %v476_v28, %v484_v24 }
  0x99   : > { %1280 = vmatpush1.bf16.msra.mxu0 %v2502_v20 }
  0x9a   : > { %1281 = vmatprep.subr.bf16.mxu0 %v2507_v26 }
  0x9c   : > { %611 = vmatmul.mubr.bf16.gmra.mxu0 %v445_v31  ;;  %v3074_v31 = vrot.slane %v476_v28, %v480_v27 }
  0x9d   : > { %620 = vmatprep.mubr.bf16.mxu0 %v2786_v0  ;;  %1282 = vmatpush1.bf16.msra.mxu0 %v2505_v25 }
  0x9e   : > { %1283 = vmatprep.subr.bf16.mxu0 %v2510_v39 }
  0xa4   : > { %621 = vmatmul.mubr.bf16.gmra.mxu0 %v446_v35 }
  0xa5   : > { %630 = vmatprep.mubr.bf16.mxu0 %v2786_v0 }
  0xac   : > { %631 = vmatmul.mubr.bf16.gmra.mxu0 %v447_v38  ;;  %v2508_v38 = vld [vmem:[#allocation8 + $0x40] ss:$8 sps:$4 sm:$0xff]  }
  0xad   : > { %640 = vmatprep.mubr.bf16.mxu0 %v2786_v0  ;;  %1284 = vmatpush1.bf16.msra.mxu0 %v2508_v38 }
  0xb4   : > { %641 = vmatmul.mubr.bf16.gmra.mxu0 %v448_v41  ;;  %v2513_v41 = vld [vmem:[#allocation8 + $0x34] ss:$8 sps:$4 sm:$0xff]  }
  0xb5   : > { %650 = vmatprep.mubr.bf16.mxu0 %v2786_v0  ;;  %1285 = vmatprep.subr.bf16.mxu0 %v2513_v41 }
  0xb6   : > { %1286 = vmatpush1.bf16.msra.mxu0 %v2511_v46 }
  0xb7   : > { %1287 = vmatprep.subr.bf16.mxu0 %v2516_v49 }
  0xba   : > { %1288 = vmatpush1.bf16.msra.mxu0 %v2514_v55 }
  0xbc   : > { %651 = vmatmul.mubr.bf16.gmra.mxu0 %v449_v44 }
  0xbd   : > { %660 = vmatprep.mubr.bf16.mxu0 %v2786_v0 }
  0xc4   : > { %661 = vmatmul.mubr.bf16.gmra.mxu0 %v450_v47 }
  0xc5   : > { %670 = vmatprep.mubr.bf16.mxu0 %v2786_v0 }
  0xcc   : > { %671 = vmatmul.mubr.bf16.gmra.mxu0 %v451_v50 }
  0xcd   : > { %680 = vmatprep.mubr.bf16.mxu0 %v2786_v0 }
  0xd4   : > { %681 = vmatmul.mubr.bf16.gmra.mxu0 %v452_v53 }
  0xd5   : > { %690 = vmatprep.mubr.bf16.mxu0 %v2786_v0 }
  0xdc   : > { %691 = vmatmul.mubr.bf16.gmra.mxu0 %v453_v58  ;;  %v2519_v58 = vld [vmem:[#allocation8 + $0x14] ss:$8 sps:$4 sm:$0xff]  }
  0xdd   : > { %700 = vmatprep.mubr.bf16.mxu0 %v2786_v0  ;;  %1289 = vmatprep.subr.bf16.mxu0 %v2519_v58 }
  0xde   : > { %1290 = vmatpush1.bf16.msra.mxu0 %v2517_v1 }
  0xdf   : > { %1291 = vmatprep.subr.bf16.mxu0 %v2522_v4 }
  0xe2   : > { %1292 = vmatpush1.bf16.msra.mxu0 %v2520_v10 }
  0xe4   : > { %701 = vmatmul.mubr.bf16.gmra.mxu0 %v454_v2 }
  0xe5   : > { %710 = vmatprep.mubr.bf16.mxu0 %v2786_v0 }
  0xec   : > { %711 = vmatmul.mubr.bf16.gmra.mxu0 %v455_v5 }
  0xed   : > { %720 = vmatprep.mubr.bf16.mxu0 %v2786_v0 }
  0xf4   : > { %721 = vmatmul.mubr.bf16.gmra.mxu0 %v456_v8 }
  0xf5   : > { %730 = vmatprep.mubr.bf16.mxu0 %v2786_v0 }
  0xfc   : > { %731 = vmatmul.mubr.bf16.gmra.mxu0 %v457_v11 }
  0xfd   : > { %740 = vmatprep.mubr.bf16.mxu0 %v2786_v0 }
 0x104   : > { %741 = vmatmul.mubr.bf16.gmra.mxu0 %v458_v14 }
 0x105   : > { %750 = vmatprep.mubr.bf16.mxu0 %v2786_v0 }
 0x10c   : > { %751 = vmatmul.mubr.bf16.gmra.mxu0 %v459_v17 }
 0x10d   : > { %1309 = vmatprep.mubr.bf16.mxu0 %v2786_v0 }
 0x154   : > { %v602_v29 = vpop.f32.mrf.mxu0 }
 0x155   : > { %v603_v36 = vadd.f32 %v602_v29, %v3074_v31 }
 0x156   : > { %v604_v32 = vpop.f32.mrf.mxu0 }
 0x157   : > { %v605_v34 = vadd.f32 %v604_v32, %v3070_v30  ;;  %v761_v47 = vmax.f32 %v603_v36, 0.0 }
 0x158   : > { %v606_v33 = vpop.f32.mrf.mxu0 }
 0x159   : > { %v607_v35 = vadd.f32 %v606_v33, %v3074_v31  ;;  %v762_v44 = vmax.f32 %v605_v34, 0.0 }
 0x15a   : > { %v608_v37 = vpop.f32.mrf.mxu0 }
 0x15b   : > { %v609_v40 = vadd.f32 %v608_v37, %v3070_v30  ;;  %v763_v42 = vmax.f32 %v607_v35, 0.0 }
 0x15c   : > { %v612_v43 = vpop.f32.mrf.mxu0 }
 0x15d   : > { %v764_v45 = vmax.f32 %v609_v40, 0.0  ;;  %v825_v51 = vpack.c.bf16 %v763_v42, %v761_v47  ;;  %v613_v56 = vadd.f32 %v612_v43, %v3074_v31 }
 0x15e   : > { %v614_v48 = vpop.f32.mrf.mxu0 }
 0x15f   : > { %v826_v50 = vpack.c.bf16 %v764_v45, %v762_v44  ;;  %v615_v53 = vadd.f32 %v614_v48, %v3070_v30  ;;  %v765_v2 = vmax.f32 %v613_v56, 0.0 }
 0x160   : > { %v616_v52 = vpop.f32.mrf.mxu0 }
 0x161   : > { %v617_v54 = vadd.f32 %v616_v52, %v3074_v31  ;;  %1024 = vmatprep.mubr.bf16.mxu1 %v826_v50  ;;  %v766_v62 = vmax.f32 %v615_v53, 0.0 }
 0x162   : > { %v618_v57 = vpop.f32.mrf.mxu0  ;;  %1025 = vmatmul.mubr.bf16.vlgmr.msra.gmra.mxu1 %v825_v51 }
 0x163   : > { %v619_v59 = vadd.f32 %v618_v57, %v3070_v30  ;;  %v767_v60 = vmax.f32 %v617_v54, 0.0 }
 0x164   : > { %v622_v61 = vpop.f32.mrf.mxu0 }
 0x165   : > { %v768_v63 = vmax.f32 %v619_v59, 0.0  ;;  %v827_v6 = vpack.c.bf16 %v767_v60, %v765_v2  ;;  %v623_v11 = vadd.f32 %v622_v61, %v3074_v31 }
 0x166   : > { %v624_v3 = vpop.f32.mrf.mxu0 }
 0x167   : > { %v828_v5 = vpack.c.bf16 %v768_v63, %v766_v62  ;;  %v625_v8 = vadd.f32 %v624_v3, %v3070_v30  ;;  %v769_v18 = vmax.f32 %v623_v11, 0.0 }
 0x168   : > { %v626_v7 = vpop.f32.mrf.mxu0 }
 0x169   : > { %v627_v9 = vadd.f32 %v626_v7, %v3074_v31  ;;  %1032 = vmatprep.mubr.bf16.mxu1 %v828_v5  ;;  %v770_v16 = vmax.f32 %v625_v8, 0.0 }
 0x16a   : > { %v628_v12 = vpop.f32.mrf.mxu0  ;;  %1033 = vmatmul.mubr.bf16.gmra.mxu1 %v827_v6 }
 0x16b   : > { %v629_v13 = vadd.f32 %v628_v12, %v3070_v30  ;;  %v771_v14 = vmax.f32 %v627_v9, 0.0 }
 0x16c   : > { %v632_v15 = vpop.f32.mrf.mxu0 }
 0x16d   : > { %v772_v17 = vmax.f32 %v629_v13, 0.0  ;;  %v829_v21 = vpack.c.bf16 %v771_v14, %v769_v18  ;;  %v633_v28 = vadd.f32 %v632_v15, %v3074_v31 }
 0x16e   : > { %v634_v19 = vpop.f32.mrf.mxu0 }
 0x16f   : > { %v830_v20 = vpack.c.bf16 %v772_v17, %v770_v16  ;;  %v635_v25 = vadd.f32 %v634_v19, %v3070_v30  ;;  %v773_v37 = vmax.f32 %v633_v28, 0.0 }
 0x170   : > { %v636_v22 = vpop.f32.mrf.mxu0 }
 0x171   : > { %v637_v26 = vadd.f32 %v636_v22, %v3074_v31  ;;  %1040 = vmatprep.mubr.bf16.mxu1 %v830_v20  ;;  %v774_v35 = vmax.f32 %v635_v25, 0.0 }
 0x172   : > { %v638_v29 = vpop.f32.mrf.mxu0  ;;  %1041 = vmatmul.mubr.bf16.gmra.mxu1 %v829_v21 }
 0x173   : > { %v639_v32 = vadd.f32 %v638_v29, %v3070_v30  ;;  %v775_v33 = vmax.f32 %v637_v26, 0.0 }
 0x174   : > { %v642_v34 = vpop.f32.mrf.mxu0 }
 0x175   : > { %v776_v36 = vmax.f32 %v639_v32, 0.0  ;;  %v831_v40 = vpack.c.bf16 %v775_v33, %v773_v37  ;;  %v643_v44 = vadd.f32 %v642_v34, %v3074_v31 }
 0x176   : > { %v644_v38 = vpop.f32.mrf.mxu0 }
 0x177   : > { %v832_v39 = vpack.c.bf16 %v776_v36, %v774_v35  ;;  %v645_v42 = vadd.f32 %v644_v38, %v3070_v30  ;;  %v777_v51 = vmax.f32 %v643_v44, 0.0 }
 0x178   : > { %v646_v41 = vpop.f32.mrf.mxu0 }
 0x179   : > { %v647_v43 = vadd.f32 %v646_v41, %v3074_v31  ;;  %1048 = vmatprep.mubr.bf16.mxu1 %v832_v39  ;;  %v778_v49 = vmax.f32 %v645_v42, 0.0 }
 0x17a   : > { %v648_v45 = vpop.f32.mrf.mxu0  ;;  %1049 = vmatmul.mubr.bf16.gmra.mxu1 %v831_v40 }
 0x17b   : > { %v649_v46 = vadd.f32 %v648_v45, %v3070_v30  ;;  %v779_v47 = vmax.f32 %v647_v43, 0.0 }
 0x17c   : > { %v652_v48 = vpop.f32.mrf.mxu0 }
 0x17d   : > { %v780_v50 = vmax.f32 %v649_v46, 0.0  ;;  %v833_v54 = vpack.c.bf16 %v779_v47, %v777_v51  ;;  %v653_v58 = vadd.f32 %v652_v48, %v3074_v31 }
 0x17e   : > { %v654_v52 = vpop.f32.mrf.mxu0 }
 0x17f   : > { %v834_v53 = vpack.c.bf16 %v780_v50, %v778_v49  ;;  %v655_v56 = vadd.f32 %v654_v52, %v3070_v30  ;;  %v781_v2 = vmax.f32 %v653_v58, 0.0 }
 0x180   : > { %v656_v55 = vpop.f32.mrf.mxu0 }
 0x181   : > { %v657_v57 = vadd.f32 %v656_v55, %v3074_v31  ;;  %1056 = vmatprep.mubr.bf16.mxu1 %v834_v53  ;;  %v782_v63 = vmax.f32 %v655_v56, 0.0 }
 0x182   : > { %v658_v59 = vpop.f32.mrf.mxu0  ;;  %1057 = vmatmul.mubr.bf16.gmra.mxu1 %v833_v54 }
 0x183   : > { %v659_v60 = vadd.f32 %v658_v59, %v3070_v30  ;;  %v783_v61 = vmax.f32 %v657_v57, 0.0 }
 0x184   : > { %v662_v62 = vpop.f32.mrf.mxu0 }
 0x185   : > { %v784_v1 = vmax.f32 %v659_v60, 0.0  ;;  %v835_v5 = vpack.c.bf16 %v783_v61, %v781_v2  ;;  %v663_v9 = vadd.f32 %v662_v62, %v3074_v31 }
 0x186   : > { %v664_v3 = vpop.f32.mrf.mxu0 }
 0x187   : > { %v836_v4 = vpack.c.bf16 %v784_v1, %v782_v63  ;;  %v665_v7 = vadd.f32 %v664_v3, %v3070_v30  ;;  %v785_v16 = vmax.f32 %v663_v9, 0.0 }
 0x188   : > { %v666_v6 = vpop.f32.mrf.mxu0 }
 0x189   : > { %v667_v8 = vadd.f32 %v666_v6, %v3074_v31  ;;  %1064 = vmatprep.mubr.bf16.mxu1 %v836_v4  ;;  %v786_v14 = vmax.f32 %v665_v7, 0.0 }
 0x18a   : > { %v668_v10 = vpop.f32.mrf.mxu0  ;;  %1065 = vmatmul.mubr.bf16.gmra.mxu1 %v835_v5 }
 0x18b   : > { %v669_v11 = vadd.f32 %v668_v10, %v3070_v30  ;;  %v787_v12 = vmax.f32 %v667_v8, 0.0 }
 0x18c   : > { %v672_v13 = vpop.f32.mrf.mxu0 }
 0x18d   : > { %v788_v15 = vmax.f32 %v669_v11, 0.0  ;;  %v837_v19 = vpack.c.bf16 %v787_v12, %v785_v16  ;;  %v673_v25 = vadd.f32 %v672_v13, %v3074_v31 }
 0x18e   : > { %v674_v17 = vpop.f32.mrf.mxu0 }
 0x18f   : > { %v838_v18 = vpack.c.bf16 %v788_v15, %v786_v14  ;;  %v675_v21 = vadd.f32 %v674_v17, %v3070_v30  ;;  %v789_v35 = vmax.f32 %v673_v25, 0.0 }
 0x190   : > { %v676_v20 = vpop.f32.mrf.mxu0 }
 0x191   : > { %v677_v22 = vadd.f32 %v676_v20, %v3074_v31  ;;  %1072 = vmatprep.mubr.bf16.mxu1 %v838_v18  ;;  %v790_v33 = vmax.f32 %v675_v21, 0.0 }
 0x192   : > { %v678_v26 = vpop.f32.mrf.mxu0  ;;  %1073 = vmatmul.mubr.bf16.gmra.mxu1 %v837_v19 }
 0x193   : > { %v679_v28 = vadd.f32 %v678_v26, %v3070_v30  ;;  %v791_v29 = vmax.f32 %v677_v22, 0.0 }
 0x194   : > { %v682_v32 = vpop.f32.mrf.mxu0 }
 0x195   : > { %v792_v34 = vmax.f32 %v679_v28, 0.0  ;;  %v839_v38 = vpack.c.bf16 %v791_v29, %v789_v35  ;;  %v683_v42 = vadd.f32 %v682_v32, %v3074_v31 }
 0x196   : > { %v684_v36 = vpop.f32.mrf.mxu0 }
 0x197   : > { %v840_v37 = vpack.c.bf16 %v792_v34, %v790_v33  ;;  %v685_v40 = vadd.f32 %v684_v36, %v3070_v30  ;;  %v793_v49 = vmax.f32 %v683_v42, 0.0 }
 0x198   : > { %v686_v39 = vpop.f32.mrf.mxu0 }
 0x199   : > { %v687_v41 = vadd.f32 %v686_v39, %v3074_v31  ;;  %1080 = vmatprep.mubr.bf16.mxu1 %v840_v37  ;;  %v794_v47 = vmax.f32 %v685_v40, 0.0 }
 0x19a   : > { %v688_v43 = vpop.f32.mrf.mxu0  ;;  %1081 = vmatmul.mubr.bf16.gmra.mxu1 %v839_v38 }
 0x19b   : > { %v689_v44 = vadd.f32 %v688_v43, %v3070_v30  ;;  %v795_v45 = vmax.f32 %v687_v41, 0.0 }
 0x19c   : > { %v692_v46 = vpop.f32.mrf.mxu0 }
 0x19d   : > { %v796_v48 = vmax.f32 %v689_v44, 0.0  ;;  %v841_v52 = vpack.c.bf16 %v795_v45, %v793_v49  ;;  %v693_v56 = vadd.f32 %v692_v46, %v3074_v31 }
 0x19e   : > { %v694_v50 = vpop.f32.mrf.mxu0 }
 0x19f   : > { %v842_v51 = vpack.c.bf16 %v796_v48, %v794_v47  ;;  %v695_v54 = vadd.f32 %v694_v50, %v3070_v30  ;;  %v797_v63 = vmax.f32 %v693_v56, 0.0 }
 0x1a0   : > { %v696_v53 = vpop.f32.mrf.mxu0 }
 0x1a1   : > { %v697_v55 = vadd.f32 %v696_v53, %v3074_v31  ;;  %1088 = vmatprep.mubr.bf16.mxu1 %v842_v51  ;;  %v798_v61 = vmax.f32 %v695_v54, 0.0 }
 0x1a2   : > { %v698_v57 = vpop.f32.mrf.mxu0  ;;  %1089 = vmatmul.mubr.bf16.gmra.mxu1 %v841_v52 }
 0x1a3   : > { %v699_v58 = vadd.f32 %v698_v57, %v3070_v30  ;;  %v799_v59 = vmax.f32 %v697_v55, 0.0 }
 0x1a4   : > { %v702_v60 = vpop.f32.mrf.mxu0 }
 0x1a5   : > { %v800_v62 = vmax.f32 %v699_v58, 0.0  ;;  %v843_v3 = vpack.c.bf16 %v799_v59, %v797_v63  ;;  %v703_v7 = vadd.f32 %v702_v60, %v3074_v31 }
 0x1a6   : > { %v704_v1 = vpop.f32.mrf.mxu0 }
 0x1a7   : > { %v844_v2 = vpack.c.bf16 %v800_v62, %v798_v61  ;;  %v705_v5 = vadd.f32 %v704_v1, %v3070_v30  ;;  %v801_v14 = vmax.f32 %v703_v7, 0.0 }
 0x1a8   : > { %v706_v4 = vpop.f32.mrf.mxu0 }
 0x1a9   : > { %v707_v6 = vadd.f32 %v706_v4, %v3074_v31  ;;  %1096 = vmatprep.mubr.bf16.mxu1 %v844_v2  ;;  %v802_v12 = vmax.f32 %v705_v5, 0.0 }
 0x1aa   : > { %v708_v8 = vpop.f32.mrf.mxu0  ;;  %1097 = vmatmul.mubr.bf16.gmra.mxu1 %v843_v3 }
 0x1ab   : > { %v709_v9 = vadd.f32 %v708_v8, %v3070_v30  ;;  %v803_v10 = vmax.f32 %v707_v6, 0.0 }
 0x1ac   : > { %v712_v11 = vpop.f32.mrf.mxu0 }
 0x1ad   : > { %v804_v13 = vmax.f32 %v709_v9, 0.0  ;;  %v845_v17 = vpack.c.bf16 %v803_v10, %v801_v14  ;;  %v713_v21 = vadd.f32 %v712_v11, %v3074_v31 }
 0x1ae   : > { %v714_v15 = vpop.f32.mrf.mxu0 }
 0x1af   : > { %v846_v16 = vpack.c.bf16 %v804_v13, %v802_v12  ;;  %v715_v19 = vadd.f32 %v714_v15, %v3070_v30  ;;  %v805_v33 = vmax.f32 %v713_v21, 0.0 }
 0x1b0   : > { %v716_v18 = vpop.f32.mrf.mxu0 }
 0x1b1   : > { %v717_v20 = vadd.f32 %v716_v18, %v3074_v31  ;;  %1104 = vmatprep.mubr.bf16.mxu1 %v846_v16  ;;  %v806_v29 = vmax.f32 %v715_v19, 0.0 }
 0x1b2   : > { %v718_v22 = vpop.f32.mrf.mxu0  ;;  %1105 = vmatmul.mubr.bf16.gmra.mxu1 %v845_v17 }
 0x1b3   : > { %v719_v25 = vadd.f32 %v718_v22, %v3070_v30  ;;  %v807_v26 = vmax.f32 %v717_v20, 0.0 }
 0x1b4   : > { %v722_v28 = vpop.f32.mrf.mxu0 }
 0x1b5   : > { %v808_v32 = vmax.f32 %v719_v25, 0.0  ;;  %v847_v36 = vpack.c.bf16 %v807_v26, %v805_v33  ;;  %v723_v40 = vadd.f32 %v722_v28, %v3074_v31  ;;  %v2523_v33 = vld [vmem:[#allocation10 + $0x78] sm:$0xff]  }
 0x1b6   : > { %v724_v34 = vpop.f32.mrf.mxu0  ;;  %2253 = vmatprep.subr.bf16.mxu1 %v2523_v33 }
 0x1b7   : > { %v848_v35 = vpack.c.bf16 %v808_v32, %v806_v29  ;;  %v725_v38 = vadd.f32 %v724_v34, %v3070_v30  ;;  %v809_v47 = vmax.f32 %v723_v40, 0.0  ;;  %v2524_v34 = vld [vmem:[#allocation10 + $0x38] sm:$0xff]  }
 0x1b8   : > { %v726_v37 = vpop.f32.mrf.mxu0  ;;  %2254 = vmatpush3.bf16.msra.mxu1 %v2524_v34 }
 0x1b9   : > { %v727_v39 = vadd.f32 %v726_v37, %v3074_v31  ;;  %1112 = vmatprep.mubr.bf16.mxu1 %v848_v35  ;;  %v810_v45 = vmax.f32 %v725_v38, 0.0  ;;  %v2525_v35 = vld [vmem:[#allocation10 + $0x70] sm:$0xff]   ;;  %v2528_v37 = vld [vmem:[#allocation10 + $0x28] sm:$0xff]  }
 0x1ba   : > { %v728_v41 = vpop.f32.mrf.mxu0  ;;  %1113 = vmatmul.mubr.bf16.gmra.mxu1 %v847_v36  ;;  %v2526_v36 = vld [vmem:[#allocation10 + $0x30] sm:$0xff]   ;;  %2255 = vmatprep.subr.bf16.mxu1 %v2525_v35 }
 0x1bb   : > { %v729_v42 = vadd.f32 %v728_v41, %v3070_v30  ;;  %v811_v43 = vmax.f32 %v727_v39, 0.0  ;;  %v2529_v41 = vld [vmem:[#allocation10 + $0x60] sm:$0xff]  }
 0x1bc   : > { %v732_v44 = vpop.f32.mrf.mxu0  ;;  %2256 = vmatpush3.bf16.msra.mxu1 %v2526_v36 }
 0x1bd   : > { %v812_v46 = vmax.f32 %v729_v42, 0.0  ;;  %v849_v50 = vpack.c.bf16 %v811_v43, %v809_v47  ;;  %v733_v54 = vadd.f32 %v732_v44, %v3074_v31  ;;  %v2530_v42 = vld [vmem:[#allocation10 + $0x20] sm:$0xff]   ;;  %v2531_v43 = vld [vmem:[#allocation10 + $0x58] sm:$0xff]  }
 0x1be   : > { %v734_v48 = vpop.f32.mrf.mxu0  ;;  %v3143_v44 = vld [vmem:[%s3426_s4] ss:$0 sm:$0xff] }
 0x1bf   : > { %v850_v49 = vpack.c.bf16 %v812_v46, %v810_v45  ;;  %v735_v52 = vadd.f32 %v734_v48, %v3070_v30  ;;  %v813_v61 = vmax.f32 %v733_v54, 0.0  ;;  %v2532_v48 = vld [vmem:[#allocation10 + $0x18] sm:$0xff]  }
 0x1c0   : > { %v736_v51 = vpop.f32.mrf.mxu0 }
 0x1c1   : > { %v737_v53 = vadd.f32 %v736_v51, %v3074_v31  ;;  %1120 = vmatprep.mubr.bf16.mxu1 %v850_v49  ;;  %v814_v59 = vmax.f32 %v735_v52, 0.0  ;;  %v2533_v51 = vld [vmem:[#allocation10 + $0x50] sm:$0xff]  }
 0x1c2   : > { %v738_v55 = vpop.f32.mrf.mxu0  ;;  %1121 = vmatmul.mubr.bf16.gmra.mxu1 %v849_v50 }
 0x1c3   : > { %v739_v56 = vadd.f32 %v738_v55, %v3070_v30  ;;  %v815_v57 = vmax.f32 %v737_v53, 0.0  ;;  %v2534_v55 = vld [vmem:[#allocation10 + $0x10] sm:$0xff]  }
 0x1c4   : > { %v742_v58 = vpop.f32.mrf.mxu0 }
 0x1c5   : > { %v816_v60 = vmax.f32 %v739_v56, 0.0  ;;  %v851_v1 = vpack.c.bf16 %v815_v57, %v813_v61  ;;  %v743_v5 = vadd.f32 %v742_v58, %v3074_v31  ;;  %v2535_v57 = vld [vmem:[#allocation10 + $0x48] sm:$0xff]  }
 0x1c6   : > { %v744_v62 = vpop.f32.mrf.mxu0  ;;  %v2536_v61 = vld [vmem:[#allocation10 + $0x8] sm:$0xff]  }
 0x1c7   : > { %v852_v63 = vpack.c.bf16 %v816_v60, %v814_v59  ;;  %v745_v3 = vadd.f32 %v744_v62, %v3070_v30  ;;  %v817_v12 = vmax.f32 %v743_v5, 0.0  ;;  %v2538_v5 = vld [vmem:[#allocation10] sm:$0xff]  }
 0x1c8   : > { %v746_v2 = vpop.f32.mrf.mxu0 }
 0x1c9   : > { %v747_v4 = vadd.f32 %v746_v2, %v3074_v31  ;;  %1128 = vmatprep.mubr.bf16.mxu1 %v852_v63  ;;  %v818_v10 = vmax.f32 %v745_v3, 0.0 }
 0x1ca   : > { %v748_v6 = vpop.f32.mrf.mxu0  ;;  %1129 = vmatmul.mubr.bf16.gmra.mxu1 %v851_v1  ;;  %v2537_v1 = vld [vmem:[#allocation10 + $0x40] sm:$0xff]  }
 0x1cb   : > { %v749_v7 = vadd.f32 %v748_v6, %v3070_v30  ;;  %v819_v8 = vmax.f32 %v747_v4, 0.0 }
 0x1cc   : > { %v752_v9 = vpop.f32.mrf.mxu0 }
 0x1cd   : > { %v820_v11 = vmax.f32 %v749_v7, 0.0  ;;  %v853_v15 = vpack.c.bf16 %v819_v8, %v817_v12  ;;  %v753_v19 = vadd.f32 %v752_v9, %v3074_v31 }
 0x1ce   : > { %v754_v13 = vpop.f32.mrf.mxu0 }
 0x1cf   : > { %v854_v14 = vpack.c.bf16 %v820_v11, %v818_v10  ;;  %v755_v17 = vadd.f32 %v754_v13, %v3070_v30  ;;  %v821_v28 = vmax.f32 %v753_v19, 0.0 }
 0x1d0   : > { %v756_v16 = vpop.f32.mrf.mxu0 }
 0x1d1   : > { %v757_v18 = vadd.f32 %v756_v16, %v3074_v31  ;;  %1136 = vmatprep.mubr.bf16.mxu1 %v854_v14  ;;  %v822_v25 = vmax.f32 %v755_v17, 0.0  ;;  %v2527_v31 = vld [vmem:[#allocation10 + $0x68] sm:$0xff]  }
 0x1d2   : > { %v758_v20 = vpop.f32.mrf.mxu0  ;;  %1137 = vmatmul.mubr.bf16.gmra.mxu1 %v853_v15  ;;  %2257 = vmatprep.subr.bf16.mxu1 %v2527_v31 }
 0x1d3   : > { %v759_v21 = vadd.f32 %v758_v20, %v3070_v30  ;;  %v823_v22 = vmax.f32 %v757_v18, 0.0  ;;  %2258 = vmatpush3.bf16.msra.mxu1 %v2528_v37 }
 0x1d4   : > { %2259 = vmatprep.subr.bf16.mxu1 %v2529_v41 }
 0x1d5   : > { %v824_v26 = vmax.f32 %v759_v21, 0.0  ;;  %v855_v32 = vpack.c.bf16 %v823_v22, %v821_v28 }
 0x1d7   : > { %v856_v29 = vpack.c.bf16 %v824_v26, %v822_v25  ;;  %2260 = vmatpush3.bf16.msra.mxu1 %v2530_v42 }
 0x1d8   : > { %2261 = vmatprep.subr.bf16.mxu1 %v2531_v43 }
 0x1d9   : > { %1144 = vmatprep.mubr.bf16.mxu1 %v856_v29 }
 0x1da   : > { %1145 = vmatmul.mubr.bf16.gmra.mxu1 %v855_v32 }
 0x1db   : > { %2262 = vmatpush3.bf16.msra.mxu1 %v2532_v48 }
 0x1dc   : > { %2263 = vmatprep.subr.bf16.mxu1 %v2533_v51 }
 0x1df   : > { %2264 = vmatpush3.bf16.msra.mxu1 %v2534_v55 }
 0x1e0   : > { %2265 = vmatprep.subr.bf16.mxu1 %v2535_v57 }
 0x1e3   : > { %2266 = vmatpush3.bf16.msra.mxu1 %v2536_v61 }
 0x1e4   : > { %2267 = vmatprep.subr.bf16.mxu1 %v2537_v1 }
 0x1e7   : > { %2268 = vmatpush3.bf16.msra.mxu1 %v2538_v5 }
 0x222   : > { %v2157_v30 = vpop.f32.mrf.mxu1 }
 0x224   : > { %v2158_v38 = vpop.f32.mrf.mxu1 }
 0x225   : > { %v2159_v40 = vadd.f32 %v2158_v38, %v2157_v30 }
 0x226   : > { %v2160_v39 = vpop.f32.mrf.mxu1 }
 0x227   : > { %v1027_v49 = vadd.f32 %v2159_v40, %v3143_v44 }
 0x228   : > { %v2161_v45 = vpop.f32.mrf.mxu1 }
 0x229   : > { %v2162_v46 = vadd.f32 %v2161_v45, %v2160_v39 }
 0x22a   : > { %v2163_v47 = vpop.f32.mrf.mxu1 }
 0x22b   : > { %v1030_v50 = vadd.f32 %v2162_v46, %v3143_v44 }
 0x22c   : > { %v2164_v52 = vpop.f32.mrf.mxu1 }
 0x22d   : > { %v1153_v53 = vpack.c.bf16 %v1030_v50, %v1027_v49  ;;  %v2165_v56 = vadd.f32 %v2164_v52, %v2163_v47 }
 0x22e   : > { %v2166_v54 = vpop.f32.mrf.mxu1 }
 0x22f   : > { %1310 = vmatmul.mubr.bf16.vlgmr.msra.gmra.mxu0 %v1153_v53  ;;  %v1035_v62 = vadd.f32 %v2165_v56, %v3143_v44 }
 0x230   : > { %v2167_v58 = vpop.f32.mrf.mxu1  ;;  %1319 = vmatprep.mubr.bf16.mxu0 %v2786_v0 }
 0x231   : > { %v2168_v59 = vadd.f32 %v2167_v58, %v2166_v54 }
 0x232   : > { %v2169_v60 = vpop.f32.mrf.mxu1 }
 0x233   : > { %v1038_v63 = vadd.f32 %v2168_v59, %v3143_v44 }
 0x234   : > { %v2170_v2 = vpop.f32.mrf.mxu1 }
 0x235   : > { %v1154_v3 = vpack.c.bf16 %v1038_v63, %v1035_v62  ;;  %v2171_v6 = vadd.f32 %v2170_v2, %v2169_v60 }
 0x236   : > { %v2172_v4 = vpop.f32.mrf.mxu1 }
 0x237   : > { %1320 = vmatmul.mubr.bf16.gmra.mxu0 %v1154_v3  ;;  %v1043_v10 = vadd.f32 %v2171_v6, %v3143_v44 }
 0x238   : > { %v2173_v7 = vpop.f32.mrf.mxu1  ;;  %1329 = vmatprep.mubr.bf16.mxu0 %v2786_v0 }
 0x239   : > { %v2174_v8 = vadd.f32 %v2173_v7, %v2172_v4 }
 0x23a   : > { %v2175_v9 = vpop.f32.mrf.mxu1 }
 0x23b   : > { %v1046_v11 = vadd.f32 %v2174_v8, %v3143_v44 }
 0x23c   : > { %v2176_v12 = vpop.f32.mrf.mxu1 }
 0x23d   : > { %v1155_v13 = vpack.c.bf16 %v1046_v11, %v1043_v10  ;;  %v2177_v15 = vadd.f32 %v2176_v12, %v2175_v9 }
 0x23e   : > { %v2178_v14 = vpop.f32.mrf.mxu1 }
 0x23f   : > { %1330 = vmatmul.mubr.bf16.gmra.mxu0 %v1155_v13  ;;  %v1051_v19 = vadd.f32 %v2177_v15, %v3143_v44 }
 0x240   : > { %v2179_v16 = vpop.f32.mrf.mxu1  ;;  %1339 = vmatprep.mubr.bf16.mxu0 %v2786_v0 }
 0x241   : > { %v2180_v17 = vadd.f32 %v2179_v16, %v2178_v14 }
 0x242   : > { %v2181_v18 = vpop.f32.mrf.mxu1 }
 0x243   : > { %v1054_v20 = vadd.f32 %v2180_v17, %v3143_v44 }
 0x244   : > { %v2182_v21 = vpop.f32.mrf.mxu1 }
 0x245   : > { %v1156_v22 = vpack.c.bf16 %v1054_v20, %v1051_v19  ;;  %v2183_v26 = vadd.f32 %v2182_v21, %v2181_v18 }
 0x246   : > { %v2184_v25 = vpop.f32.mrf.mxu1 }
 0x247   : > { %1340 = vmatmul.mubr.bf16.gmra.mxu0 %v1156_v22  ;;  %v1059_v33 = vadd.f32 %v2183_v26, %v3143_v44 }
 0x248   : > { %v2185_v28 = vpop.f32.mrf.mxu1  ;;  %1349 = vmatprep.mubr.bf16.mxu0 %v2786_v0 }
 0x249   : > { %v2186_v29 = vadd.f32 %v2185_v28, %v2184_v25 }
 0x24a   : > { %v2187_v32 = vpop.f32.mrf.mxu1 }
 0x24b   : > { %v1062_v34 = vadd.f32 %v2186_v29, %v3143_v44 }
 0x24c   : > { %v2188_v35 = vpop.f32.mrf.mxu1 }
 0x24d   : > { %v1157_v36 = vpack.c.bf16 %v1062_v34, %v1059_v33  ;;  %v2189_v37 = vadd.f32 %v2188_v35, %v2187_v32 }
 0x24e   : > { %v2190_v31 = vpop.f32.mrf.mxu1 }
 0x24f   : > { %1350 = vmatmul.mubr.bf16.gmra.mxu0 %v1157_v36  ;;  %v1067_v40 = vadd.f32 %v2189_v37, %v3143_v44 }
 0x250   : > { %v2191_v30 = vpop.f32.mrf.mxu1  ;;  %1359 = vmatprep.mubr.bf16.mxu0 %v2786_v0 }
 0x251   : > { %v2192_v38 = vadd.f32 %v2191_v30, %v2190_v31 }
 0x252   : > { %v2193_v39 = vpop.f32.mrf.mxu1 }
 0x253   : > { %v1070_v41 = vadd.f32 %v2192_v38, %v3143_v44 }
 0x254   : > { %v2194_v42 = vpop.f32.mrf.mxu1 }
 0x255   : > { %v1158_v43 = vpack.c.bf16 %v1070_v41, %v1067_v40  ;;  %v2195_v46 = vadd.f32 %v2194_v42, %v2193_v39 }
 0x256   : > { %v2196_v45 = vpop.f32.mrf.mxu1 }
 0x257   : > { %1360 = vmatmul.mubr.bf16.gmra.mxu0 %v1158_v43  ;;  %v1075_v50 = vadd.f32 %v2195_v46, %v3143_v44 }
 0x258   : > { %v2197_v47 = vpop.f32.mrf.mxu1  ;;  %1369 = vmatprep.mubr.bf16.mxu0 %v2786_v0 }
 0x259   : > { %v2198_v48 = vadd.f32 %v2197_v47, %v2196_v45 }
 0x25a   : > { %v2199_v49 = vpop.f32.mrf.mxu1 }
 0x25b   : > { %v1078_v51 = vadd.f32 %v2198_v48, %v3143_v44 }
 0x25c   : > { %v2200_v52 = vpop.f32.mrf.mxu1 }
 0x25d   : > { %v1159_v53 = vpack.c.bf16 %v1078_v51, %v1075_v50  ;;  %v2201_v55 = vadd.f32 %v2200_v52, %v2199_v49 }
 0x25e   : > { %v2202_v54 = vpop.f32.mrf.mxu1 }
 0x25f   : > { %1370 = vmatmul.mubr.bf16.gmra.mxu0 %v1159_v53  ;;  %v1083_v59 = vadd.f32 %v2201_v55, %v3143_v44 }
 0x260   : > { %v2203_v56 = vpop.f32.mrf.mxu1  ;;  %1379 = vmatprep.mubr.bf16.mxu0 %v2786_v0 }
 0x261   : > { %v2204_v57 = vadd.f32 %v2203_v56, %v2202_v54 }
 0x262   : > { %v2205_v58 = vpop.f32.mrf.mxu1 }
 0x263   : > { %v1086_v60 = vadd.f32 %v2204_v57, %v3143_v44 }
 0x264   : > { %v2206_v61 = vpop.f32.mrf.mxu1 }
 0x265   : > { %v1160_v62 = vpack.c.bf16 %v1086_v60, %v1083_v59  ;;  %v2207_v1 = vadd.f32 %v2206_v61, %v2205_v58 }
 0x266   : > { %v2208_v63 = vpop.f32.mrf.mxu1 }
 0x267   : > { %1380 = vmatmul.mubr.bf16.gmra.mxu0 %v1160_v62  ;;  %v1091_v5 = vadd.f32 %v2207_v1, %v3143_v44 }
 0x268   : > { %v2209_v2 = vpop.f32.mrf.mxu1  ;;  %1389 = vmatprep.mubr.bf16.mxu0 %v2786_v0 }
 0x269   : > { %v2210_v3 = vadd.f32 %v2209_v2, %v2208_v63 }
 0x26a   : > { %v2211_v4 = vpop.f32.mrf.mxu1 }
 0x26b   : > { %v1094_v6 = vadd.f32 %v2210_v3, %v3143_v44 }
 0x26c   : > { %v2212_v7 = vpop.f32.mrf.mxu1 }
 0x26d   : > { %v1161_v8 = vpack.c.bf16 %v1094_v6, %v1091_v5  ;;  %v2213_v10 = vadd.f32 %v2212_v7, %v2211_v4 }
 0x26e   : > { %v2214_v9 = vpop.f32.mrf.mxu1 }
 0x26f   : > { %1390 = vmatmul.mubr.bf16.gmra.mxu0 %v1161_v8  ;;  %v1099_v14 = vadd.f32 %v2213_v10, %v3143_v44 }
 0x270   : > { %v2215_v11 = vpop.f32.mrf.mxu1  ;;  %1399 = vmatprep.mubr.bf16.mxu0 %v2786_v0 }
 0x271   : > { %v2216_v12 = vadd.f32 %v2215_v11, %v2214_v9  ;;  %v1185_v11 = vld [vmem:[%s3428_s6] sm:$0x3] }
 0x272   : > { %v2217_v13 = vpop.f32.mrf.mxu1 }
 0x273   : > { %v1102_v15 = vadd.f32 %v2216_v12, %v3143_v44 }
 0x274   : > { %v2218_v16 = vpop.f32.mrf.mxu1 }
 0x275   : > { %v1162_v17 = vpack.c.bf16 %v1102_v15, %v1099_v14  ;;  %v2219_v19 = vadd.f32 %v2218_v16, %v2217_v13  ;;  %v3197_v13 = vrot.slane %v1185_v11, %v484_v24  ;;  %v3201_v14 = vrot.slane %v1185_v11, %v480_v27 }
 0x276   : > { %v2220_v18 = vpop.f32.mrf.mxu1 }
 0x277   : > { %1400 = vmatmul.mubr.bf16.gmra.mxu0 %v1162_v17  ;;  %v1107_v25 = vadd.f32 %v2219_v19, %v3143_v44 }
 0x278   : > { %v2221_v20 = vpop.f32.mrf.mxu1  ;;  %1409 = vmatprep.mubr.bf16.mxu0 %v2786_v0 }
 0x279   : > { %v2222_v21 = vadd.f32 %v2221_v20, %v2220_v18 }
 0x27a   : > { %v2223_v22 = vpop.f32.mrf.mxu1 }
 0x27b   : > { %v1110_v26 = vadd.f32 %v2222_v21, %v3143_v44 }
 0x27c   : > { %v2224_v28 = vpop.f32.mrf.mxu1 }
 0x27d   : > { %v1163_v29 = vpack.c.bf16 %v1110_v26, %v1107_v25  ;;  %v2225_v33 = vadd.f32 %v2224_v28, %v2223_v22 }
 0x27e   : > { %v2226_v32 = vpop.f32.mrf.mxu1 }
 0x27f   : > { %1410 = vmatmul.mubr.bf16.gmra.mxu0 %v1163_v29  ;;  %v1115_v31 = vadd.f32 %v2225_v33, %v3143_v44 }
 0x280   : > { %v2227_v34 = vpop.f32.mrf.mxu1  ;;  %1419 = vmatprep.mubr.bf16.mxu0 %v2786_v0 }
 0x281   : > { %v2228_v35 = vadd.f32 %v2227_v34, %v2226_v32 }
 0x282   : > { %v2229_v36 = vpop.f32.mrf.mxu1 }
 0x283   : > { %v1118_v37 = vadd.f32 %v2228_v35, %v3143_v44 }
 0x284   : > { %v2230_v30 = vpop.f32.mrf.mxu1 }
 0x285   : > { %v1164_v38 = vpack.c.bf16 %v1118_v37, %v1115_v31  ;;  %v2231_v40 = vadd.f32 %v2230_v30, %v2229_v36 }
 0x286   : > { %v2232_v39 = vpop.f32.mrf.mxu1 }
 0x287   : > { %1420 = vmatmul.mubr.bf16.gmra.mxu0 %v1164_v38  ;;  %v1123_v45 = vadd.f32 %v2231_v40, %v3143_v44 }
 0x288   : > { %v2233_v41 = vpop.f32.mrf.mxu1  ;;  %1429 = vmatprep.mubr.bf16.mxu0 %v2786_v0 }
 0x289   : > { %v2234_v42 = vadd.f32 %v2233_v41, %v2232_v39 }
 0x28a   : > { %v2235_v43 = vpop.f32.mrf.mxu1 }
 0x28b   : > { %v1126_v46 = vadd.f32 %v2234_v42, %v3143_v44 }
 0x28c   : > { %v2236_v47 = vpop.f32.mrf.mxu1 }
 0x28d   : > { %v1165_v48 = vpack.c.bf16 %v1126_v46, %v1123_v45  ;;  %v2237_v50 = vadd.f32 %v2236_v47, %v2235_v43 }
 0x28e   : > { %v2238_v49 = vpop.f32.mrf.mxu1 }
 0x28f   : > { %1430 = vmatmul.mubr.bf16.gmra.mxu0 %v1165_v48  ;;  %v1131_v54 = vadd.f32 %v2237_v50, %v3143_v44 }
 0x290   : > { %v2239_v51 = vpop.f32.mrf.mxu1  ;;  %1439 = vmatprep.mubr.bf16.mxu0 %v2786_v0 }
 0x291   : > { %v2240_v52 = vadd.f32 %v2239_v51, %v2238_v49 }
 0x292   : > { %v2241_v53 = vpop.f32.mrf.mxu1 }
 0x293   : > { %v1134_v55 = vadd.f32 %v2240_v52, %v3143_v44 }
 0x294   : > { %v2242_v56 = vpop.f32.mrf.mxu1 }
 0x295   : > { %v1166_v57 = vpack.c.bf16 %v1134_v55, %v1131_v54  ;;  %v2243_v59 = vadd.f32 %v2242_v56, %v2241_v53 }
 0x296   : > { %v2244_v58 = vpop.f32.mrf.mxu1 }
 0x297   : > { %1440 = vmatmul.mubr.bf16.gmra.mxu0 %v1166_v57  ;;  %v1139_v63 = vadd.f32 %v2243_v59, %v3143_v44 }
 0x298   : > { %v2245_v60 = vpop.f32.mrf.mxu1  ;;  %1449 = vmatprep.mubr.bf16.mxu0 %v2786_v0 }
 0x299   : > { %v2246_v61 = vadd.f32 %v2245_v60, %v2244_v58 }
 0x29a   : > { %v2247_v62 = vpop.f32.mrf.mxu1 }
 0x29b   : > { %v1142_v1 = vadd.f32 %v2246_v61, %v3143_v44 }
 0x29c   : > { %v2248_v2 = vpop.f32.mrf.mxu1 }
 0x29d   : > { %v1167_v3 = vpack.c.bf16 %v1142_v1, %v1139_v63  ;;  %v2249_v5 = vadd.f32 %v2248_v2, %v2247_v62 }
 0x29e   : > { %v2250_v4 = vpop.f32.mrf.mxu1 }
 0x29f   : > { %1450 = vmatmul.mubr.bf16.gmra.mxu0 %v1167_v3  ;;  %v1147_v8 = vadd.f32 %v2249_v5, %v3143_v44 }
 0x2a0   : > { %v2251_v6 = vpop.f32.mrf.mxu1  ;;  %1459 = vmatprep.mubr.bf16.mxu0 %v2786_v0 }
 0x2a1   : > { %v2252_v7 = vadd.f32 %v2251_v6, %v2250_v4 }
 0x2a3   : > { %v1150_v9 = vadd.f32 %v2252_v7, %v3143_v44 }
 0x2a5   : > { %v1168_v10 = vpack.c.bf16 %v1150_v9, %v1147_v8 }
 0x2a7   : > { %1460 = vmatmul.mubr.bf16.gmra.mxu0 %v1168_v10 }
 0x2ef   : > { %v1311_v12 = vpop.f32.mrf.mxu0 }
 0x2f0   : > { %v1312_v17 = vadd.f32 %v1311_v12, %v3201_v14 }
 0x2f1   : > { %v1313_v0 = vpop.f32.mrf.mxu0 }
 0x2f2   : > { %v1314_v16 = vadd.f32 %v1313_v0, %v3197_v13  ;;  %v1470_v25 = vmax.f32 %v1312_v17, 0.0 }
 0x2f3   : > { %v1315_v15 = vpop.f32.mrf.mxu0 }
 0x2f4   : > { %v1316_v44 = vadd.f32 %v1315_v15, %v3201_v14  ;;  %v1471_v22 = vmax.f32 %v1314_v16, 0.0 }
 0x2f5   : > { %v1317_v18 = vpop.f32.mrf.mxu0 }
 0x2f6   : > { %v1318_v19 = vadd.f32 %v1317_v18, %v3197_v13  ;;  %v1472_v20 = vmax.f32 %v1316_v44, 0.0 }
 0x2f7   : > { %v1321_v21 = vpop.f32.mrf.mxu0 }
 0x2f8   : > { %v1473_v24 = vmax.f32 %v1318_v19, 0.0  ;;  %v1534_v27 = vpack.c.bf16 %v1472_v20, %v1470_v25  ;;  %v1322_v33 = vadd.f32 %v1321_v21, %v3201_v14 }
 0x2f9   : > { %v1323_v26 = vpop.f32.mrf.mxu0 }
 0x2fa   : > { %v1535_v23 = vpack.c.bf16 %v1473_v24, %v1471_v22  ;;  %v1324_v29 = vadd.f32 %v1323_v26, %v3197_v13  ;;  %v1474_v38 = vmax.f32 %v1322_v33, 0.0 }
 0x2fb   : > { %v1325_v28 = vpop.f32.mrf.mxu0 }
 0x2fc   : > { %v1326_v32 = vadd.f32 %v1325_v28, %v3201_v14  ;;  %1733 = vmatprep.mubr.bf16.mxu1 %v1535_v23  ;;  %v1475_v37 = vmax.f32 %v1324_v29, 0.0 }
 0x2fd   : > { %v1327_v34 = vpop.f32.mrf.mxu0  ;;  %1734 = vmatmul.mubr.bf16.vlgmr.msra.gmra.mxu1 %v1534_v27 }
 0x2fe   : > { %v1328_v35 = vadd.f32 %v1327_v34, %v3197_v13  ;;  %v1476_v36 = vmax.f32 %v1326_v32, 0.0 }
 0x2ff   : > { %v1331_v31 = vpop.f32.mrf.mxu0 }
 0x300   : > { %v1477_v30 = vmax.f32 %v1328_v35, 0.0  ;;  %v1536_v41 = vpack.c.bf16 %v1476_v36, %v1474_v38  ;;  %v1332_v46 = vadd.f32 %v1331_v31, %v3201_v14 }
 0x301   : > { %v1333_v39 = vpop.f32.mrf.mxu0 }
 0x302   : > { %v1537_v40 = vpack.c.bf16 %v1477_v30, %v1475_v37  ;;  %v1334_v43 = vadd.f32 %v1333_v39, %v3197_v13  ;;  %v1478_v53 = vmax.f32 %v1332_v46, 0.0 }
 0x303   : > { %v1335_v42 = vpop.f32.mrf.mxu0 }
 0x304   : > { %v1336_v45 = vadd.f32 %v1335_v42, %v3201_v14  ;;  %1741 = vmatprep.mubr.bf16.mxu1 %v1537_v40  ;;  %v1479_v51 = vmax.f32 %v1334_v43, 0.0 }
 0x305   : > { %v1337_v47 = vpop.f32.mrf.mxu0  ;;  %1742 = vmatmul.mubr.bf16.gmra.mxu1 %v1536_v41 }
 0x306   : > { %v1338_v48 = vadd.f32 %v1337_v47, %v3197_v13  ;;  %v1480_v49 = vmax.f32 %v1336_v45, 0.0 }
 0x307   : > { %v1341_v50 = vpop.f32.mrf.mxu0 }
 0x308   : > { %v1481_v52 = vmax.f32 %v1338_v48, 0.0  ;;  %v1538_v56 = vpack.c.bf16 %v1480_v49, %v1478_v53  ;;  %v1342_v60 = vadd.f32 %v1341_v50, %v3201_v14 }
 0x309   : > { %v1343_v54 = vpop.f32.mrf.mxu0 }
 0x30a   : > { %v1539_v55 = vpack.c.bf16 %v1481_v52, %v1479_v51  ;;  %v1344_v58 = vadd.f32 %v1343_v54, %v3197_v13  ;;  %v1482_v4 = vmax.f32 %v1342_v60, 0.0 }
 0x30b   : > { %v1345_v57 = vpop.f32.mrf.mxu0 }
 0x30c   : > { %v1346_v59 = vadd.f32 %v1345_v57, %v3201_v14  ;;  %1749 = vmatprep.mubr.bf16.mxu1 %v1539_v55  ;;  %v1483_v2 = vmax.f32 %v1344_v58, 0.0 }
 0x30d   : > { %v1347_v61 = vpop.f32.mrf.mxu0  ;;  %1750 = vmatmul.mubr.bf16.gmra.mxu1 %v1538_v56 }
 0x30e   : > { %v1348_v62 = vadd.f32 %v1347_v61, %v3197_v13  ;;  %v1484_v63 = vmax.f32 %v1346_v59, 0.0 }
 0x30f   : > { %v1351_v1 = vpop.f32.mrf.mxu0 }
 0x310   : > { %v1485_v3 = vmax.f32 %v1348_v62, 0.0  ;;  %v1540_v7 = vpack.c.bf16 %v1484_v63, %v1482_v4  ;;  %v1352_v11 = vadd.f32 %v1351_v1, %v3201_v14 }
 0x311   : > { %v1353_v5 = vpop.f32.mrf.mxu0 }
 0x312   : > { %v1541_v6 = vpack.c.bf16 %v1485_v3, %v1483_v2  ;;  %v1354_v9 = vadd.f32 %v1353_v5, %v3197_v13  ;;  %v1486_v18 = vmax.f32 %v1352_v11, 0.0 }
 0x313   : > { %v1355_v8 = vpop.f32.mrf.mxu0 }
 0x314   : > { %v1356_v10 = vadd.f32 %v1355_v8, %v3201_v14  ;;  %1757 = vmatprep.mubr.bf16.mxu1 %v1541_v6  ;;  %v1487_v44 = vmax.f32 %v1354_v9, 0.0 }
 0x315   : > { %v1357_v12 = vpop.f32.mrf.mxu0  ;;  %1758 = vmatmul.mubr.bf16.gmra.mxu1 %v1540_v7 }
 0x316   : > { %v1358_v0 = vadd.f32 %v1357_v12, %v3197_v13  ;;  %v1488_v15 = vmax.f32 %v1356_v10, 0.0 }
 0x317   : > { %v1361_v16 = vpop.f32.mrf.mxu0 }
 0x318   : > { %v1489_v17 = vmax.f32 %v1358_v0, 0.0  ;;  %v1542_v21 = vpack.c.bf16 %v1488_v15, %v1486_v18  ;;  %v1362_v26 = vadd.f32 %v1361_v16, %v3201_v14 }
 0x319   : > { %v1363_v19 = vpop.f32.mrf.mxu0 }
 0x31a   : > { %v1543_v20 = vpack.c.bf16 %v1489_v17, %v1487_v44  ;;  %v1364_v24 = vadd.f32 %v1363_v19, %v3197_v13  ;;  %v1490_v34 = vmax.f32 %v1362_v26, 0.0 }
 0x31b   : > { %v1365_v22 = vpop.f32.mrf.mxu0 }
 0x31c   : > { %v1366_v25 = vadd.f32 %v1365_v22, %v3201_v14  ;;  %1765 = vmatprep.mubr.bf16.mxu1 %v1543_v20  ;;  %v1491_v32 = vmax.f32 %v1364_v24, 0.0 }
 0x31d   : > { %v1367_v23 = vpop.f32.mrf.mxu0  ;;  %1766 = vmatmul.mubr.bf16.gmra.mxu1 %v1542_v21 }
 0x31e   : > { %v1368_v27 = vadd.f32 %v1367_v23, %v3197_v13  ;;  %v1492_v28 = vmax.f32 %v1366_v25, 0.0 }
 0x31f   : > { %v1371_v29 = vpop.f32.mrf.mxu0 }
 0x320   : > { %v1493_v33 = vmax.f32 %v1368_v27, 0.0  ;;  %v1544_v31 = vpack.c.bf16 %v1492_v28, %v1490_v34  ;;  %v1372_v39 = vadd.f32 %v1371_v29, %v3201_v14 }
 0x321   : > { %v1373_v35 = vpop.f32.mrf.mxu0 }
 0x322   : > { %v1545_v36 = vpack.c.bf16 %v1493_v33, %v1491_v32  ;;  %v1374_v30 = vadd.f32 %v1373_v35, %v3197_v13  ;;  %v1494_v47 = vmax.f32 %v1372_v39, 0.0 }
 0x323   : > { %v1375_v37 = vpop.f32.mrf.mxu0 }
 0x324   : > { %v1376_v38 = vadd.f32 %v1375_v37, %v3201_v14  ;;  %1773 = vmatprep.mubr.bf16.mxu1 %v1545_v36  ;;  %v1495_v45 = vmax.f32 %v1374_v30, 0.0 }
 0x325   : > { %v1377_v40 = vpop.f32.mrf.mxu0  ;;  %1774 = vmatmul.mubr.bf16.gmra.mxu1 %v1544_v31 }
 0x326   : > { %v1378_v41 = vadd.f32 %v1377_v40, %v3197_v13  ;;  %v1496_v42 = vmax.f32 %v1376_v38, 0.0 }
 0x327   : > { %v1381_v43 = vpop.f32.mrf.mxu0 }
 0x328   : > { %v1497_v46 = vmax.f32 %v1378_v41, 0.0  ;;  %v1546_v50 = vpack.c.bf16 %v1496_v42, %v1494_v47  ;;  %v1382_v54 = vadd.f32 %v1381_v43, %v3201_v14 }
 0x329   : > { %v1383_v48 = vpop.f32.mrf.mxu0 }
 0x32a   : > { %v1547_v49 = vpack.c.bf16 %v1497_v46, %v1495_v45  ;;  %v1384_v52 = vadd.f32 %v1383_v48, %v3197_v13  ;;  %v1498_v61 = vmax.f32 %v1382_v54, 0.0 }
 0x32b   : > { %v1385_v51 = vpop.f32.mrf.mxu0 }
 0x32c   : > { %v1386_v53 = vadd.f32 %v1385_v51, %v3201_v14  ;;  %1781 = vmatprep.mubr.bf16.mxu1 %v1547_v49  ;;  %v1499_v59 = vmax.f32 %v1384_v52, 0.0 }
 0x32d   : > { %v1387_v55 = vpop.f32.mrf.mxu0  ;;  %1782 = vmatmul.mubr.bf16.gmra.mxu1 %v1546_v50 }
 0x32e   : > { %v1388_v56 = vadd.f32 %v1387_v55, %v3197_v13  ;;  %v1500_v57 = vmax.f32 %v1386_v53, 0.0 }
 0x32f   : > { %v1391_v58 = vpop.f32.mrf.mxu0 }
 0x330   : > { %v1501_v60 = vmax.f32 %v1388_v56, 0.0  ;;  %v1548_v1 = vpack.c.bf16 %v1500_v57, %v1498_v61  ;;  %v1392_v5 = vadd.f32 %v1391_v58, %v3201_v14 }
 0x331   : > { %v1393_v62 = vpop.f32.mrf.mxu0 }
 0x332   : > { %v1549_v63 = vpack.c.bf16 %v1501_v60, %v1499_v59  ;;  %v1394_v3 = vadd.f32 %v1393_v62, %v3197_v13  ;;  %v1502_v12 = vmax.f32 %v1392_v5, 0.0 }
 0x333   : > { %v1395_v2 = vpop.f32.mrf.mxu0 }
 0x334   : > { %v1396_v4 = vadd.f32 %v1395_v2, %v3201_v14  ;;  %1789 = vmatprep.mubr.bf16.mxu1 %v1549_v63  ;;  %v1503_v10 = vmax.f32 %v1394_v3, 0.0 }
 0x335   : > { %v1397_v6 = vpop.f32.mrf.mxu0  ;;  %1790 = vmatmul.mubr.bf16.gmra.mxu1 %v1548_v1 }
 0x336   : > { %v1398_v7 = vadd.f32 %v1397_v6, %v3197_v13  ;;  %v1504_v8 = vmax.f32 %v1396_v4, 0.0 }
 0x337   : > { %v1401_v9 = vpop.f32.mrf.mxu0 }
 0x338   : > { %v1505_v11 = vmax.f32 %v1398_v7, 0.0  ;;  %v1550_v16 = vpack.c.bf16 %v1504_v8, %v1502_v12  ;;  %v1402_v19 = vadd.f32 %v1401_v9, %v3201_v14 }
 0x339   : > { %v1403_v0 = vpop.f32.mrf.mxu0 }
 0x33a   : > { %v1551_v15 = vpack.c.bf16 %v1505_v11, %v1503_v10  ;;  %v1404_v17 = vadd.f32 %v1403_v0, %v3197_v13  ;;  %v1506_v23 = vmax.f32 %v1402_v19, 0.0 }
 0x33b   : > { %v1405_v44 = vpop.f32.mrf.mxu0 }
 0x33c   : > { %v1406_v18 = vadd.f32 %v1405_v44, %v3201_v14  ;;  %1797 = vmatprep.mubr.bf16.mxu1 %v1551_v15  ;;  %v1507_v25 = vmax.f32 %v1404_v17, 0.0 }
 0x33d   : > { %v1407_v20 = vpop.f32.mrf.mxu0  ;;  %1798 = vmatmul.mubr.bf16.gmra.mxu1 %v1550_v16 }
 0x33e   : > { %v1408_v21 = vadd.f32 %v1407_v20, %v3197_v13  ;;  %v1508_v22 = vmax.f32 %v1406_v18, 0.0 }
 0x33f   : > { %v1411_v24 = vpop.f32.mrf.mxu0 }
 0x340   : > { %v1509_v26 = vmax.f32 %v1408_v21, 0.0  ;;  %v1552_v29 = vpack.c.bf16 %v1508_v22, %v1506_v23  ;;  %v1412_v35 = vadd.f32 %v1411_v24, %v3201_v14 }
 0x341   : > { %v1413_v27 = vpop.f32.mrf.mxu0 }
 0x342   : > { %v1553_v28 = vpack.c.bf16 %v1509_v26, %v1507_v25  ;;  %v1414_v33 = vadd.f32 %v1413_v27, %v3197_v13  ;;  %v1510_v40 = vmax.f32 %v1412_v35, 0.0 }
 0x343   : > { %v1415_v32 = vpop.f32.mrf.mxu0 }
 0x344   : > { %v1416_v34 = vadd.f32 %v1415_v32, %v3201_v14  ;;  %1805 = vmatprep.mubr.bf16.mxu1 %v1553_v28  ;;  %v1511_v38 = vmax.f32 %v1414_v33, 0.0 }
 0x345   : > { %v1417_v36 = vpop.f32.mrf.mxu0  ;;  %1806 = vmatmul.mubr.bf16.gmra.mxu1 %v1552_v29 }
 0x346   : > { %v1418_v31 = vadd.f32 %v1417_v36, %v3197_v13  ;;  %v1512_v37 = vmax.f32 %v1416_v34, 0.0 }
 0x347   : > { %v1421_v30 = vpop.f32.mrf.mxu0 }
 0x348   : > { %v1513_v39 = vmax.f32 %v1418_v31, 0.0  ;;  %v1554_v43 = vpack.c.bf16 %v1512_v37, %v1510_v40  ;;  %v1422_v48 = vadd.f32 %v1421_v30, %v3201_v14 }
 0x349   : > { %v1423_v41 = vpop.f32.mrf.mxu0 }
 0x34a   : > { %v1555_v42 = vpack.c.bf16 %v1513_v39, %v1511_v38  ;;  %v1424_v46 = vadd.f32 %v1423_v41, %v3197_v13  ;;  %v1514_v55 = vmax.f32 %v1422_v48, 0.0 }
 0x34b   : > { %v1425_v45 = vpop.f32.mrf.mxu0 }
 0x34c   : > { %v1426_v47 = vadd.f32 %v1425_v45, %v3201_v14  ;;  %1813 = vmatprep.mubr.bf16.mxu1 %v1555_v42  ;;  %v1515_v53 = vmax.f32 %v1424_v46, 0.0 }
 0x34d   : > { %v1427_v49 = vpop.f32.mrf.mxu0  ;;  %1814 = vmatmul.mubr.bf16.gmra.mxu1 %v1554_v43 }
 0x34e   : > { %v1428_v50 = vadd.f32 %v1427_v49, %v3197_v13  ;;  %v1516_v51 = vmax.f32 %v1426_v47, 0.0 }
 0x34f   : > { %v1431_v52 = vpop.f32.mrf.mxu0 }
 0x350   : > { %v1517_v54 = vmax.f32 %v1428_v50, 0.0  ;;  %v1556_v58 = vpack.c.bf16 %v1516_v51, %v1514_v55  ;;  %v1432_v62 = vadd.f32 %v1431_v52, %v3201_v14 }
 0x351   : > { %v1433_v56 = vpop.f32.mrf.mxu0 }
 0x352   : > { %v1557_v57 = vpack.c.bf16 %v1517_v54, %v1515_v53  ;;  %v1434_v60 = vadd.f32 %v1433_v56, %v3197_v13  ;;  %v1518_v6 = vmax.f32 %v1432_v62, 0.0  ;;  %v2539_v56 = vld [vmem:[%s2998_s27] sm:$0xff]  ;;  %v2540_v62 = vld [vmem:[%s2998_s27 + $0x8] sm:$0xff] }
 0x353   : > { %v1435_v59 = vpop.f32.mrf.mxu0 }
 0x354   : > { %v1436_v61 = vadd.f32 %v1435_v59, %v3201_v14  ;;  %1821 = vmatprep.mubr.bf16.mxu1 %v1557_v57  ;;  %v1519_v4 = vmax.f32 %v1434_v60, 0.0 }
 0x355   : > { %v1437_v63 = vpop.f32.mrf.mxu0  ;;  %1822 = vmatmul.mubr.bf16.gmra.mxu1 %v1556_v58 }
 0x356   : > { %v1438_v1 = vadd.f32 %v1437_v63, %v3197_v13  ;;  %v1520_v2 = vmax.f32 %v1436_v61, 0.0 }
 0x357   : > { %v1441_v3 = vpop.f32.mrf.mxu0 }
 0x358   : > { %v1521_v5 = vmax.f32 %v1438_v1, 0.0  ;;  %v1558_v9 = vpack.c.bf16 %v1520_v2, %v1518_v6  ;;  %v1442_v0 = vadd.f32 %v1441_v3, %v3201_v14 }
 0x359   : > { %v1443_v7 = vpop.f32.mrf.mxu0 }
 0x35a   : > { %v1559_v8 = vpack.c.bf16 %v1521_v5, %v1519_v4  ;;  %v1444_v11 = vadd.f32 %v1443_v7, %v3197_v13  ;;  %v1522_v20 = vmax.f32 %v1442_v0, 0.0  ;;  %v2541_v5 = vld [vmem:[%s2998_s27 + $0x10] sm:$0xff] }
 0x35b   : > { %v1445_v10 = vpop.f32.mrf.mxu0 }
 0x35c   : > { %v1446_v12 = vadd.f32 %v1445_v10, %v3201_v14  ;;  %1829 = vmatprep.mubr.bf16.mxu1 %v1559_v8  ;;  %v1523_v18 = vmax.f32 %v1444_v11, 0.0  ;;  %v2542_v11 = vld [vmem:[%s2998_s27 + $0x18] sm:$0xff] }
 0x35d   : > { %v1447_v15 = vpop.f32.mrf.mxu0  ;;  %1830 = vmatmul.mubr.bf16.gmra.mxu1 %v1558_v9 }
 0x35e   : > { %v1448_v16 = vadd.f32 %v1447_v15, %v3197_v13  ;;  %v1524_v44 = vmax.f32 %v1446_v12, 0.0 }
 0x35f   : > { %v1451_v17 = vpop.f32.mrf.mxu0 }
 0x360   : > { %v1525_v19 = vmax.f32 %v1448_v16, 0.0  ;;  %v1560_v24 = vpack.c.bf16 %v1524_v44, %v1522_v20  ;;  %v1452_v27 = vadd.f32 %v1451_v17, %v3201_v14  ;;  %v2543_v17 = vld [vmem:[%s2998_s27 + $0x20] sm:$0xff] }
 0x361   : > { %v1453_v21 = vpop.f32.mrf.mxu0 }
 0x362   : > { %v1561_v22 = vpack.c.bf16 %v1525_v19, %v1523_v18  ;;  %v1454_v26 = vadd.f32 %v1453_v21, %v3197_v13  ;;  %v1526_v36 = vmax.f32 %v1452_v27, 0.0 }
 0x363   : > { %v1455_v25 = vpop.f32.mrf.mxu0 }
 0x364   : > { %v1456_v23 = vadd.f32 %v1455_v25, %v3201_v14  ;;  %1837 = vmatprep.mubr.bf16.mxu1 %v1561_v22  ;;  %v1527_v34 = vmax.f32 %v1454_v26, 0.0 }
 0x365   : > { %v1457_v28 = vpop.f32.mrf.mxu0  ;;  %1838 = vmatmul.mubr.bf16.gmra.mxu1 %v1560_v24  ;;  %v2544_v24 = vld [vmem:[%s2998_s27 + $0x28] sm:$0xff] }
 0x366   : > { %v1458_v29 = vadd.f32 %v1457_v28, %v3197_v13  ;;  %v1528_v32 = vmax.f32 %v1456_v23, 0.0 }
 0x367   : > { %v1461_v33 = vpop.f32.mrf.mxu0 }
 0x368   : > { %v1529_v35 = vmax.f32 %v1458_v29, 0.0  ;;  %v1562_v30 = vpack.c.bf16 %v1528_v32, %v1526_v36  ;;  %v1462_v41 = vadd.f32 %v1461_v33, %v3201_v14  ;;  %v2545_v29 = vld [vmem:[%s2998_s27 + $0x30] sm:$0xff] }
 0x369   : > { %v1463_v31 = vpop.f32.mrf.mxu0 }
 0x36a   : > { %v1563_v37 = vpack.c.bf16 %v1529_v35, %v1527_v34  ;;  %v1464_v39 = vadd.f32 %v1463_v31, %v3197_v13  ;;  %v1530_v48 = vmax.f32 %v1462_v41, 0.0  ;;  %v2546_v31 = vld [vmem:[%s2998_s27 + $0x38] sm:$0xff]  ;;  %v2547_v41 = vld [vmem:[%s2998_s27 + $0x40] sm:$0xff] }
 0x36b   : > { %v1465_v38 = vpop.f32.mrf.mxu0 }
 0x36c   : > { %v1466_v40 = vadd.f32 %v1465_v38, %v3201_v14  ;;  %1845 = vmatprep.mubr.bf16.mxu1 %v1563_v37  ;;  %v1531_v46 = vmax.f32 %v1464_v39, 0.0  ;;  %v3270_v14 = vld [vmem:[%s3430_s8] ss:$0 sm:$0xff] }
 0x36d   : > { %v1467_v42 = vpop.f32.mrf.mxu0  ;;  %1846 = vmatmul.mubr.bf16.gmra.mxu1 %v1562_v30 }
 0x36e   : > { %v1468_v43 = vadd.f32 %v1467_v42, %v3197_v13  ;;  %v1532_v45 = vmax.f32 %v1466_v40, 0.0 }
 0x370   : > { %v1533_v47 = vmax.f32 %v1468_v43, 0.0  ;;  %v1564_v50 = vpack.c.bf16 %v1532_v45, %v1530_v48  ;;  %v2548_v48 = vld [vmem:[%s2998_s27 + $0x48] sm:$0xff] }
 0x372   : > { %v1565_v49 = vpack.c.bf16 %v1533_v47, %v1531_v46 }
 0x374   : > { %1853 = vmatprep.mubr.bf16.mxu1 %v1565_v49 }
 0x375   : > { %1854 = vmatmul.mubr.bf16.gmra.mxu1 %v1564_v50 }
 0x3bd   : > { %v2269_v51 = vpop.f32.mrf.mxu1 }
 0x3bf   : > { %v2270_v52 = vpop.f32.mrf.mxu1 }
 0x3c0   : > { %v2271_v53 = vadd.f32 %v2270_v52, %v2269_v51 }
 0x3c1   : > { %v2272_v13 = vpop.f32.mrf.mxu1 }
 0x3c2   : > { %v1736_v54 = vadd.f32 %v2271_v53, %v3270_v14 }
 0x3c3   : > { %v2273_v55 = vpop.f32.mrf.mxu1 }
 0x3c4   : > { %v1862_v57 = vadd.f32 %v2539_v56, %v1736_v54  ;;  %v2274_v58 = vadd.f32 %v2273_v55, %v2272_v13  ;;  %v2549_v13 = vld [vmem:[%s2998_s27 + $0x50] sm:$0xff] }
 0x3c5   : > { %v2275_v59 = vpop.f32.mrf.mxu1 }
 0x3c6   : > { %1894 = vst [vmem:[%s3276_s23] sm:$0xff] %v1862_v57  ;;  %v1739_v60 = vadd.f32 %v2274_v58, %v3270_v14 }
 0x3c7   : > { %v2276_v61 = vpop.f32.mrf.mxu1 }
 0x3c8   : > { %v1863_v63 = vadd.f32 %v2540_v62, %v1739_v60  ;;  %v2277_v1 = vadd.f32 %v2276_v61, %v2275_v59  ;;  %v2550_v59 = vld [vmem:[%s2998_s27 + $0x58] sm:$0xff] }
 0x3c9   : > { %v2278_v2 = vpop.f32.mrf.mxu1 }
 0x3ca   : > { %1895 = vst [vmem:[%s3276_s23 + $0x8] sm:$0xff] %v1863_v63  ;;  %v1744_v3 = vadd.f32 %v2277_v1, %v3270_v14 }
 0x3cb   : > { %v2279_v4 = vpop.f32.mrf.mxu1 }
 0x3cc   : > { %v1864_v6 = vadd.f32 %v2541_v5, %v1744_v3  ;;  %v2280_v7 = vadd.f32 %v2279_v4, %v2278_v2  ;;  %v2551_v2 = vld [vmem:[%s2998_s27 + $0x60] sm:$0xff] }
 0x3cd   : > { %v2281_v8 = vpop.f32.mrf.mxu1 }
 0x3ce   : > { %1896 = vst [vmem:[%s3276_s23 + $0x10] sm:$0xff] %v1864_v6  ;;  %v1747_v9 = vadd.f32 %v2280_v7, %v3270_v14 }
 0x3cf   : > { %v2282_v10 = vpop.f32.mrf.mxu1 }
 0x3d0   : > { %v1865_v12 = vadd.f32 %v2542_v11, %v1747_v9  ;;  %v2283_v0 = vadd.f32 %v2282_v10, %v2281_v8  ;;  %v2552_v8 = vld [vmem:[%s2998_s27 + $0x68] sm:$0xff] }
 0x3d1   : > { %v2284_v15 = vpop.f32.mrf.mxu1 }
 0x3d2   : > { %1897 = vst [vmem:[%s3276_s23 + $0x18] sm:$0xff] %v1865_v12  ;;  %v1752_v16 = vadd.f32 %v2283_v0, %v3270_v14 }
 0x3d3   : > { %v2285_v44 = vpop.f32.mrf.mxu1 }
 0x3d4   : > { %v1866_v18 = vadd.f32 %v2543_v17, %v1752_v16  ;;  %v2286_v19 = vadd.f32 %v2285_v44, %v2284_v15  ;;  %v2553_v15 = vld [vmem:[%s2998_s27 + $0x70] sm:$0xff] }
 0x3d5   : > { %v2287_v20 = vpop.f32.mrf.mxu1 }
 0x3d6   : > { %1898 = vst [vmem:[%s3276_s23 + $0x20] sm:$0xff] %v1866_v18  ;;  %v1755_v21 = vadd.f32 %v2286_v19, %v3270_v14 }
 0x3d7   : > { %v2288_v22 = vpop.f32.mrf.mxu1 }
 0x3d8   : > { %v1867_v25 = vadd.f32 %v2544_v24, %v1755_v21  ;;  %v2289_v26 = vadd.f32 %v2288_v22, %v2287_v20  ;;  %v2554_v20 = vld [vmem:[%s2998_s27 + $0x78] sm:$0xff] }
 0x3d9   : > { %v2290_v23 = vpop.f32.mrf.mxu1 }
 0x3da   : > { %1899 = vst [vmem:[%s3276_s23 + $0x28] sm:$0xff] %v1867_v25  ;;  %v1760_v27 = vadd.f32 %v2289_v26, %v3270_v14 }
 0x3db   : > { %v2291_v28 = vpop.f32.mrf.mxu1 }
 0x3dc   : > { %v1868_v32 = vadd.f32 %v2545_v29, %v1760_v27  ;;  %v2292_v33 = vadd.f32 %v2291_v28, %v2290_v23  ;;  %v2555_v23 = vld [vmem:[%s2998_s27 + $0x80] sm:$0xff] }
 0x3dd   : > { %v2293_v34 = vpop.f32.mrf.mxu1 }
 0x3de   : > { %1900 = vst [vmem:[%s3276_s23 + $0x30] sm:$0xff] %v1868_v32  ;;  %v1763_v35 = vadd.f32 %v2292_v33, %v3270_v14 }
 0x3df   : > { %v2294_v36 = vpop.f32.mrf.mxu1 }
 0x3e0   : > { %v1869_v37 = vadd.f32 %v2546_v31, %v1763_v35  ;;  %v2295_v30 = vadd.f32 %v2294_v36, %v2293_v34  ;;  %v2556_v34 = vld [vmem:[%s2998_s27 + $0x88] sm:$0xff] }
 0x3e1   : > { %v2296_v38 = vpop.f32.mrf.mxu1 }
 0x3e2   : > { %1901 = vst [vmem:[%s3276_s23 + $0x38] sm:$0xff] %v1869_v37  ;;  %v1768_v39 = vadd.f32 %v2295_v30, %v3270_v14 }
 0x3e3   : > { %v2297_v40 = vpop.f32.mrf.mxu1 }
 0x3e4   : > { %v1870_v42 = vadd.f32 %v2547_v41, %v1768_v39  ;;  %v2298_v43 = vadd.f32 %v2297_v40, %v2296_v38  ;;  %v2557_v38 = vld [vmem:[%s2998_s27 + $0x90] sm:$0xff] }
 0x3e5   : > { %v2299_v45 = vpop.f32.mrf.mxu1 }
 0x3e6   : > { %1902 = vst [vmem:[%s3276_s23 + $0x40] sm:$0xff] %v1870_v42  ;;  %v1771_v46 = vadd.f32 %v2298_v43, %v3270_v14 }
 0x3e7   : > { %v2300_v47 = vpop.f32.mrf.mxu1 }
 0x3e8   : > { %v1871_v49 = vadd.f32 %v2548_v48, %v1771_v46  ;;  %v2301_v50 = vadd.f32 %v2300_v47, %v2299_v45  ;;  %v2558_v45 = vld [vmem:[%s2998_s27 + $0x98] sm:$0xff] }
 0x3e9   : > { %v2302_v51 = vpop.f32.mrf.mxu1 }
 0x3ea   : > { %1903 = vst [vmem:[%s3276_s23 + $0x48] sm:$0xff] %v1871_v49  ;;  %v1776_v52 = vadd.f32 %v2301_v50, %v3270_v14 }
 0x3eb   : > { %v2303_v53 = vpop.f32.mrf.mxu1 }
 0x3ec   : > { %v1872_v54 = vadd.f32 %v2549_v13, %v1776_v52  ;;  %v2304_v55 = vadd.f32 %v2303_v53, %v2302_v51  ;;  %v2559_v51 = vld [vmem:[%s2998_s27 + $0xa0] sm:$0xff] }
 0x3ed   : > { %v2305_v56 = vpop.f32.mrf.mxu1 }
 0x3ee   : > { %1904 = vst [vmem:[%s3276_s23 + $0x50] sm:$0xff] %v1872_v54  ;;  %v1779_v57 = vadd.f32 %v2304_v55, %v3270_v14 }
 0x3ef   : > { %v2306_v58 = vpop.f32.mrf.mxu1 }
 0x3f0   : > { %v1873_v60 = vadd.f32 %v2550_v59, %v1779_v57  ;;  %v2307_v61 = vadd.f32 %v2306_v58, %v2305_v56  ;;  %v2560_v56 = vld [vmem:[%s2998_s27 + $0xa8] sm:$0xff] }
 0x3f1   : > { %v2308_v62 = vpop.f32.mrf.mxu1 }
 0x3f2   : > { %1905 = vst [vmem:[%s3276_s23 + $0x58] sm:$0xff] %v1873_v60  ;;  %v1784_v63 = vadd.f32 %v2307_v61, %v3270_v14 }
 0x3f3   : > { %v2309_v1 = vpop.f32.mrf.mxu1 }
 0x3f4   : > { %v1874_v3 = vadd.f32 %v2551_v2, %v1784_v63  ;;  %v2310_v4 = vadd.f32 %v2309_v1, %v2308_v62  ;;  %v2561_v62 = vld [vmem:[%s2998_s27 + $0xb0] sm:$0xff] }
 0x3f5   : > { %v2311_v5 = vpop.f32.mrf.mxu1 }
 0x3f6   : > { %1906 = vst [vmem:[%s3276_s23 + $0x60] sm:$0xff] %v1874_v3  ;;  %v1787_v6 = vadd.f32 %v2310_v4, %v3270_v14 }
 0x3f7   : > { %v2312_v7 = vpop.f32.mrf.mxu1 }
 0x3f8   : > { %v1875_v9 = vadd.f32 %v2552_v8, %v1787_v6  ;;  %v2313_v10 = vadd.f32 %v2312_v7, %v2311_v5  ;;  %v2562_v5 = vld [vmem:[%s2998_s27 + $0xb8] sm:$0xff] }
 0x3f9   : > { %v2314_v11 = vpop.f32.mrf.mxu1 }
 0x3fa   : > { %1907 = vst [vmem:[%s3276_s23 + $0x68] sm:$0xff] %v1875_v9  ;;  %v1792_v12 = vadd.f32 %v2313_v10, %v3270_v14 }
 0x3fb   : > { %v2315_v0 = vpop.f32.mrf.mxu1 }
 0x3fc   : > { %v1876_v16 = vadd.f32 %v2553_v15, %v1792_v12  ;;  %v2316_v44 = vadd.f32 %v2315_v0, %v2314_v11  ;;  %v2563_v11 = vld [vmem:[%s2998_s27 + $0xc0] sm:$0xff] }
 0x3fd   : > { %v2317_v17 = vpop.f32.mrf.mxu1 }
 0x3fe   : > { %1908 = vst [vmem:[%s3276_s23 + $0x70] sm:$0xff] %v1876_v16  ;;  %v1795_v18 = vadd.f32 %v2316_v44, %v3270_v14 }
 0x3ff   : > { %v2318_v19 = vpop.f32.mrf.mxu1 }
 0x400   : > { %v1877_v21 = vadd.f32 %v2554_v20, %v1795_v18  ;;  %v2319_v22 = vadd.f32 %v2318_v19, %v2317_v17  ;;  %v2564_v17 = vld [vmem:[%s2998_s27 + $0xc8] sm:$0xff] }
 0x401   : > { %v2320_v24 = vpop.f32.mrf.mxu1 }
 0x402   : > { %1909 = vst [vmem:[%s3276_s23 + $0x78] sm:$0xff] %v1877_v21  ;;  %v1800_v25 = vadd.f32 %v2319_v22, %v3270_v14 }
 0x403   : > { %v2321_v26 = vpop.f32.mrf.mxu1 }
 0x404   : > { %v1878_v27 = vadd.f32 %v2555_v23, %v1800_v25  ;;  %v2322_v28 = vadd.f32 %v2321_v26, %v2320_v24  ;;  %v2565_v24 = vld [vmem:[%s2998_s27 + $0xd0] sm:$0xff] }
 0x405   : > { %v2323_v29 = vpop.f32.mrf.mxu1 }
 0x406   : > { %1910 = vst [vmem:[%s3276_s23 + $0x80] sm:$0xff] %v1878_v27  ;;  %v1803_v32 = vadd.f32 %v2322_v28, %v3270_v14 }
 0x407   : > { %v2324_v33 = vpop.f32.mrf.mxu1 }
 0x408   : > { %v1879_v35 = vadd.f32 %v2556_v34, %v1803_v32  ;;  %v2325_v36 = vadd.f32 %v2324_v33, %v2323_v29  ;;  %v2566_v29 = vld [vmem:[%s2998_s27 + $0xd8] sm:$0xff] }
 0x409   : > { %v2326_v31 = vpop.f32.mrf.mxu1 }
 0x40a   : > { %1911 = vst [vmem:[%s3276_s23 + $0x88] sm:$0xff] %v1879_v35  ;;  %v1808_v37 = vadd.f32 %v2325_v36, %v3270_v14 }
 0x40b   : > { %v2327_v30 = vpop.f32.mrf.mxu1 }
 0x40c   : > { %v1880_v39 = vadd.f32 %v2557_v38, %v1808_v37  ;;  %v2328_v40 = vadd.f32 %v2327_v30, %v2326_v31  ;;  %v2567_v31 = vld [vmem:[%s2998_s27 + $0xe0] sm:$0xff] }
 0x40d   : > { %v2329_v41 = vpop.f32.mrf.mxu1 }
 0x40e   : > { %1912 = vst [vmem:[%s3276_s23 + $0x90] sm:$0xff] %v1880_v39  ;;  %v1811_v42 = vadd.f32 %v2328_v40, %v3270_v14 }
 0x40f   : > { %v2330_v43 = vpop.f32.mrf.mxu1 }
 0x410   : > { %v1881_v46 = vadd.f32 %v2558_v45, %v1811_v42  ;;  %v2331_v47 = vadd.f32 %v2330_v43, %v2329_v41  ;;  %v2568_v41 = vld [vmem:[%s2998_s27 + $0xe8] sm:$0xff] }
 0x411   : > { %v2332_v48 = vpop.f32.mrf.mxu1 }
 0x412   : > { %1913 = vst [vmem:[%s3276_s23 + $0x98] sm:$0xff] %v1881_v46  ;;  %v1816_v49 = vadd.f32 %v2331_v47, %v3270_v14 }
 0x413   : > { %v2333_v50 = vpop.f32.mrf.mxu1 }
 0x414   : > { %v1882_v52 = vadd.f32 %v2559_v51, %v1816_v49  ;;  %v2334_v53 = vadd.f32 %v2333_v50, %v2332_v48  ;;  %v2569_v48 = vld [vmem:[%s2998_s27 + $0xf0] sm:$0xff] }
 0x415   : > { %v2335_v13 = vpop.f32.mrf.mxu1 }
 0x416   : > { %1914 = vst [vmem:[%s3276_s23 + $0xa0] sm:$0xff] %v1882_v52  ;;  %v1819_v54 = vadd.f32 %v2334_v53, %v3270_v14  ;;  %v2570_v52 = vld [vmem:[%s2998_s27 + $0xf8] sm:$0xff] }
 0x417   : > { %v2336_v55 = vpop.f32.mrf.mxu1 }
 0x418   : > { %v1883_v57 = vadd.f32 %v2560_v56, %v1819_v54  ;;  %v2337_v58 = vadd.f32 %v2336_v55, %v2335_v13 }
 0x419   : > { %v2338_v59 = vpop.f32.mrf.mxu1 }
 0x41a   : > { %1915 = vst [vmem:[%s3276_s23 + $0xa8] sm:$0xff] %v1883_v57  ;;  %v1824_v60 = vadd.f32 %v2337_v58, %v3270_v14 }
 0x41b   : > { %v2339_v61 = vpop.f32.mrf.mxu1 }
 0x41c   : > { %v1884_v63 = vadd.f32 %v2561_v62, %v1824_v60  ;;  %v2340_v1 = vadd.f32 %v2339_v61, %v2338_v59 }
 0x41d   : > { %v2341_v2 = vpop.f32.mrf.mxu1 }
 0x41e   : > { %1916 = vst [vmem:[%s3276_s23 + $0xb0] sm:$0xff] %v1884_v63  ;;  %v1827_v3 = vadd.f32 %v2340_v1, %v3270_v14 }
 0x41f   : > { %v2342_v4 = vpop.f32.mrf.mxu1 }
 0x420   : > { %v1885_v6 = vadd.f32 %v2562_v5, %v1827_v3  ;;  %v2343_v7 = vadd.f32 %v2342_v4, %v2341_v2 }
 0x421   : > { %v2344_v8 = vpop.f32.mrf.mxu1 }
 0x422   : > { %1917 = vst [vmem:[%s3276_s23 + $0xb8] sm:$0xff] %v1885_v6  ;;  %v1832_v9 = vadd.f32 %v2343_v7, %v3270_v14 }
 0x423   : > { %v2345_v10 = vpop.f32.mrf.mxu1 }
 0x424   : > { %v1886_v12 = vadd.f32 %v2563_v11, %v1832_v9  ;;  %v2346_v0 = vadd.f32 %v2345_v10, %v2344_v8 }
 0x425   : > { %v2347_v15 = vpop.f32.mrf.mxu1 }
 0x426   : > { %1918 = vst [vmem:[%s3276_s23 + $0xc0] sm:$0xff] %v1886_v12  ;;  %v1835_v16 = vadd.f32 %v2346_v0, %v3270_v14 }
 0x427   : > { %v2348_v44 = vpop.f32.mrf.mxu1 }
 0x428   : > { %v1887_v18 = vadd.f32 %v2564_v17, %v1835_v16  ;;  %v2349_v19 = vadd.f32 %v2348_v44, %v2347_v15 }
 0x429   : > { %v2350_v20 = vpop.f32.mrf.mxu1 }
 0x42a   : > { %1919 = vst [vmem:[%s3276_s23 + $0xc8] sm:$0xff] %v1887_v18  ;;  %v1840_v21 = vadd.f32 %v2349_v19, %v3270_v14 }
 0x42b   : > { %v2351_v22 = vpop.f32.mrf.mxu1 }
 0x42c   : > { %v1888_v25 = vadd.f32 %v2565_v24, %v1840_v21  ;;  %v2352_v26 = vadd.f32 %v2351_v22, %v2350_v20 }
 0x42d   : > { %v2353_v23 = vpop.f32.mrf.mxu1 }
 0x42e   : > { %1920 = vst [vmem:[%s3276_s23 + $0xd0] sm:$0xff] %v1888_v25  ;;  %v1843_v27 = vadd.f32 %v2352_v26, %v3270_v14 }
 0x42f   : > { %v2354_v28 = vpop.f32.mrf.mxu1 }
 0x430   : > { %v1889_v32 = vadd.f32 %v2566_v29, %v1843_v27  ;;  %v2355_v33 = vadd.f32 %v2354_v28, %v2353_v23 }
 0x431   : > { %v2356_v34 = vpop.f32.mrf.mxu1 }
 0x432   : > { %1921 = vst [vmem:[%s3276_s23 + $0xd8] sm:$0xff] %v1889_v32  ;;  %v1848_v35 = vadd.f32 %v2355_v33, %v3270_v14 }
 0x433   : > { %v2357_v36 = vpop.f32.mrf.mxu1 }
 0x434   : > { %v1890_v37 = vadd.f32 %v2567_v31, %v1848_v35  ;;  %v2358_v30 = vadd.f32 %v2357_v36, %v2356_v34 }
 0x435   : > { %v2359_v38 = vpop.f32.mrf.mxu1 }
 0x436   : > { %1922 = vst [vmem:[%s3276_s23 + $0xe0] sm:$0xff] %v1890_v37  ;;  %v1851_v39 = vadd.f32 %v2358_v30, %v3270_v14 }
 0x437   : > { %v2360_v40 = vpop.f32.mrf.mxu1 }
 0x438   : > { %v1891_v42 = vadd.f32 %v2568_v41, %v1851_v39  ;;  %v2361_v43 = vadd.f32 %v2360_v40, %v2359_v38 }
 0x439   : > { %v2362_v45 = vpop.f32.mrf.mxu1 }
 0x43a   : > { %1923 = vst [vmem:[%s3276_s23 + $0xe8] sm:$0xff] %v1891_v42  ;;  %v1856_v46 = vadd.f32 %v2361_v43, %v3270_v14 }
 0x43b   : > { %v2363_v47 = vpop.f32.mrf.mxu1 }
 0x43c   : > { %v1892_v49 = vadd.f32 %v2569_v48, %v1856_v46  ;;  %v2364_v50 = vadd.f32 %v2363_v47, %v2362_v45 }
 0x43e   : > { %1924 = vst [vmem:[%s3276_s23 + $0xf0] sm:$0xff] %v1892_v49  ;;  %v1859_v51 = vadd.f32 %v2364_v50, %v3270_v14 }
 0x440   : > { %v1893_v53 = vadd.f32 %v2570_v52, %v1859_v51 }
 0x442   : > { %1925 = vst [vmem:[%s3276_s23 + $0xf8] sm:$0xff] %v1893_v53 }
 0x443   : > { %2716 = shalt.err (!%p2713_p5)
}
 0x444   : > { %s2717_s27 = scalar_lea.hbm %s3375_s15, 4096  ;;  %s2721_s18 = scalar_lea.hbm %s3431_s9, 8192 }
 0x445   : > { %p2718_p6 = scmp.ne.s32.totalorder %s3375_s15, %s2717_s27  ;;  %p2722_p9 = scmp.lt.s32.totalorder %s3375_s15, %s3431_s9 }
 0x446   : > { %p2723_p2 = scmp.lt.s32.totalorder %s2721_s18, %s2717_s27 }
 0x447   : > { %p2719_p4 = pnand %p2718_p6, %p3458_p12 }
 0x448   : > { %p2724_p3 = por %p2723_p2, %p2722_p9 }
 0x449   : > { %p2720_p8 = pneg %p2719_p4 }
 0x44b   : > { %p2725_p10 = pnand %p2724_p3, %p2720_p8 }
 0x44d   : > { %2728 = shalt.err (!%p2725_p10)
}
 0x44e   : > { %s2788_s5 = smov 128   ;;  %s2789_s21 = smov 8  }
 0x44f   : > { %2383 = dma.vmem_to_hbm [thread:$0]  (%p3458_p12), %s3377_s25, 4096, %s3375_s15, %s1927_s17, %s2788_s5, %s2788_s5, %s2789_s21  }
 0x450 PF: > { %s1955_s26 = sand.u32 1, %s2763_s30   ;;  %p3459_p7 = scmp.ne.s32.totalorder %s3442_s16, 0 }
 0x451   : > { %p3460_p1 = scmp.ge.s32.totalorder %s2775_s12, 2  ;;  %s1956_s13 = scalar_lea.sflag [#allocation4], %s1955_s26 }
 0x453   : > { %p2403_p13 = pnand %p3460_p1, %p3459_p7 }
 0x455   : > { %p2404_p0 = pneg %p2403_p13 }
 0x457   : > { %2758 = dma.done.wait (%p2404_p0), %s1956_s13, 4096  }
 0x458   : > { %2760 = vsyncadd (%p2404_p0), %s1956_s13, 4294963200  ;;  %p24_p11 = scmp.ge.s32.totalorder %s2934_s24, 4   ;;  %s3461_s30 = smov %s2767_s10 }
 0x459   : > { %s3462_s10 = smov %s2771_s11  ;;  %s3463_s11 = smov %s2950_s22 }
 0x45a   : > { %s3464_s12 = smov %s2934_s24  ;;  %26 = sbr.rel (!%p24_p11) target bundleno = 11 (0xb), region = 117 }
 0x45f   :  { %1961 = vsyncpa [#allocation3], 1 }
 0x460   :  { %1963 = vsyncpa [#allocation3 + $0x1], 1 }
 0x461   :  { %1964 = vsyncpa [#allocation6], 1 }
 0x462   :  { %1965 = vsyncpa [#allocation9], 1 }
 0x463   :  { %1966 = vsyncpa [#allocation4], 1 }
 0x464   :  { %1968 = vsyncpa [#allocation4 + $0x1], 1 }

</bundles_post_ra>
